<compile_context>
chip_gen: v5e
topology: v5e:2x2
jax: 0.10.0
libtpu: 0.0.40
codegen_flags: <defaults>
</compile_context>

<pallas_src>
import numpy as np
import jax
import jax.numpy as jnp
from jax.experimental import pallas as pl
from jax.experimental.pallas import tpu as pltpu

# ----------------------- synthetic config (small shapes) -----------------------
SEQ_LEN = 8          # L = seq_length - pred_length
PRED_LEN = 4         # P
EMBED = 32           # E = filter_embed_size
HIDDEN = 32          # hidden_size
N_FEAT = 16          # N  (number of variables per group)
BATCH = 2            # B
N_GROUPS = 2         # number of entries in x_list (grid axis)

EPS = 1e-5           # RevIN eps
LN_EPS = 1e-5        # LayerNorm eps (torch default)
LAMBDA = 0.01        # softshrink sparsity_threshold
LEAKY = 0.01         # LeakyReLU default slope
FILTER_SCALE = 0.3   # init scale for filter params (module uses 0.02; larger keeps the
                     # data path non-degenerate for this synthetic test)


# ---------------- shared (batch-independent) ortho DFT matrices, built ONCE ----------------
def build_dft_matrices(n):
    """Forward rfft (ortho) as a (2*Fp, N) matrix (real rows then imag rows, padded to a
    multiple of 8), and the irfft (ortho, n=N) as a (2*N, Fp) matrix (real-part half over
    imag-part half).  Shared across batch and groups (batch lives in lanes)."""
    f = n // 2 + 1
    f_pad = ((f + 7) // 8) * 8
    k = np.arange(f, dtype=np.float64)[:, None]
    m = np.arange(n, dtype=np.float64)[None, :]
    ang = 2.0 * np.pi * k * m / n
    scale = 1.0 / np.sqrt(n)

    fwd = np.zeros((2 * f_pad, n))
    fwd[0:f] = np.cos(ang) * scale                       # Re(rfft)
    fwd[f_pad:f_pad + f] = -np.sin(ang) * scale          # Im(rfft)

    w = np.full((f, 1), 2.0)                              # Hermitian doubling
    w[0, 0] = 1.0
    if n % 2 == 0:
        w[-1, 0] = 1.0
    inv = np.zeros((2 * n, f_pad))
    inv[0:n, 0:f] = (np.cos(ang) * w * scale).T           # irfft wrt real part
    inv[n:2 * n, 0:f] = (-np.sin(ang) * w * scale).T      # irfft wrt imag part
    return jnp.asarray(fwd, jnp.float32), jnp.asarray(inv, jnp.float32)


# --------------------------------- the kernel -----------------------------------
def texfilter_kernel(x_ref, aff_ref, emb_ref, dft_ref, idft_ref,
                     vece_ref, vbe_ref, fc1_ref, wout_ref, o_ref):
    bn = x_ref.shape[0]                 # B*N rows, ordered (b, n)
    n_var = dft_ref.shape[1]            # N
    f_pad = idft_ref.shape[1]           # padded rfft length Fp
    e_dim = emb_ref.shape[1]            # E
    hid = wout_ref.shape[0] - 1         # H
    n_b = bn // n_var                   # B (static)

    x = x_ref[...]                      # (B*N, L) f32
    aff_w = aff_ref[:, 0:1]             # RevIN affine weight (per variable row)
    aff_b = aff_ref[:, 1:2]             # RevIN affine bias
    inv_aff = aff_ref[:, 2:3]           # 1 / (aff_w + EPS^2), precomputed host-side

    # ---- RevIN 'norm': statistics over the time axis, per (batch, variable) row ----
    mean = jnp.mean(x, axis=1, keepdims=True)
    var = jnp.mean((x - mean) ** 2, axis=1, keepdims=True)       # unbiased=False
    vpe = var + EPS
    inv_std = jax.lax.rsqrt(vpe)                                 # EUP, no divide
    stdev = vpe * inv_std                                        # sqrt(var + eps)
    xn = (x - mean) * inv_std * aff_w + aff_b                    # (B*N, L)

    # ---- embedding Linear(L -> E): bf16 MXU operands, f32 accumulate ----
    emb_b, ln_w, ln_b = vece_ref[0:1, :], vece_ref[1:2, :], vece_ref[2:3, :]
    e = jnp.dot(xn.astype(jnp.bfloat16), emb_ref[...],
                preferred_element_type=jnp.float32) + emb_b      # (B*N, E) f32
    mu = jnp.mean(e, axis=-1, keepdims=True)
    vr = jnp.mean((e - mu) ** 2, axis=-1, keepdims=True)
    e = (e - mu) * jax.lax.rsqrt(vr + LN_EPS) * ln_w + ln_b      # layernorm (f32)

    # ---- batch-in-lanes relayout: (B*N, E) -> (N, B*E); lane-side concat, no transpose ----
    e_lanes = jnp.concatenate(
        [e[i * n_var:(i + 1) * n_var, :] for i in range(n_b)], axis=1)   # (N, B*E)

    # ---- rfft along the variable axis: ONE shared (2*Fp, N) DFT matmul (f32) ----
    xf = jnp.dot(dft_ref[...], e_lanes, preferred_element_type=jnp.float32)
    xr = xf[0:f_pad, :]                                          # (Fp, B*E) real
    xi = xf[f_pad:2 * f_pad, :]                                  # (Fp, B*E) imag

    # ---- texfilter: complex per-embed-dim filter + softshrink (VPU, f32) ----
    w0, w1 = vbe_ref[0:1, :], vbe_ref[1:2, :]
    v0, v1 = vbe_ref[2:3, :], vbe_ref[3:4, :]
    rb1, ib1 = vbe_ref[4:5, :], vbe_ref[5:6, :]
    rb2, ib2 = vbe_ref[6:7, :], vbe_ref[7:8, :]
    o1r = jnp.maximum(xr * w0 - xi * w1 + rb1, 0.0)
    o1i = jnp.maximum(xi * w0 + xr * w1 + ib1, 0.0)
    o2r = o1r * v0 - o1i * v1 + rb2
    o2i = o1i * v0 + o1r * v1 + ib2

    def softshrink(y):
        return jnp.where(y > LAMBDA, y - LAMBDA,
                         jnp.where(y < -LAMBDA, y + LAMBDA, jnp.zeros_like(y)))

    fr, fi = softshrink(o2r), softshrink(o2i)

    # elementwise complex multiply x_freq * weight (rows f >= F of xr/xi are zero,
    # so padded frequencies stay exactly zero)
    yr = xr * fr - xi * fi
    yi = xr * fi + xi * fr

    # ---- irfft (n=N, ortho): two half matmuls (real + imag), no in-kernel concat ----
    rec_lanes = (jnp.dot(idft_ref[0:n_var, :], yr, preferred_element_type=jnp.float32) +
                 jnp.dot(idft_ref[n_var:2 * n_var, :], yi,
                         preferred_element_type=jnp.float32))    # (N, B*E)

    # ---- relayout back to (B*N, E), rows ordered (b, n) again ----
    rec = jnp.concatenate(
        [rec_lanes[:, i * e_dim:(i + 1) * e_dim] for i in range(n_b)], axis=0)

    # ---- layernorm1 (its affine is folded into fc1 host-side); dropout -> identity ----
    mu1 = jnp.mean(rec, axis=-1, keepdims=True)
    vr1 = jnp.mean((rec - mu1) ** 2, axis=-1, keepdims=True)
    recn = (rec - mu1) * jax.lax.rsqrt(vr1 + LN_EPS)

    # ---- fc1 (+ folded LN1 affine) + LeakyReLU ----
    h = jnp.dot(recn.astype(jnp.bfloat16), fc1_ref[0:e_dim, :],
                preferred_element_type=jnp.float32) + fc1_ref[e_dim:e_dim + 1, :]
    h = jnp.where(h >= 0, h, LEAKY * h)

    # ---- fused (fc2 @ output) projection: (B*N, H) @ (H, P) ----
    out = jnp.dot(h.astype(jnp.bfloat16), wout_ref[0:hid, :],
                  preferred_element_type=jnp.float32) + wout_ref[hid:hid + 1, :]

    # ---- RevIN 'denorm' ----
    o_ref[...] = (out - aff_b) * inv_aff * stdev + mean          # (B*N, P)


# ---------------- one-time host-side packing (hoisted out of the per-call path) ----------------
def prepare_packed(params, batch, n_var):
    E = params["emb_w"].shape[1]
    G = params["aff_w"].shape[0]

    # per-(b, n)-row RevIN table, columns [affine_w, affine_b, 1/(affine_w + eps^2)]
    aff_w, aff_b = params["aff_w"], params["aff_b"]              # (G, N)
    inv_aff = 1.0 / (aff_w + EPS * EPS)                          # exact denorm reciprocal
    aff = jnp.stack([aff_w, aff_b, inv_aff], axis=-1)            # (G, N, 3)
    aff = jnp.tile(aff[:, None, :, :], (1, batch, 1, 1)).reshape(G, batch * n_var, 3)

    # (1, E)-wide parameters used before the batch-in-lanes relayout
    vece = jnp.concatenate([params["emb_b"], params["ln_w"], params["ln_b"]],
                           axis=0).astype(jnp.float32)           # (3, E)

    # frequency-domain filter parameters, tiled across the batch lane blocks
    vbe = jnp.concatenate([params["w"][0:1], params["w"][1:2],
                           params["w1"][0:1], params["w1"][1:2],
                           params["rb1"], params["ib1"],
                           params["rb2"], params["ib2"]], axis=0)
    vbe = jnp.tile(vbe, (1, batch)).astype(jnp.float32)          # (8, B*E)

    # exact fold of LayerNorm1's affine into fc1 + fc1 bias row
    fc1_w = params["fc1_w"] * params["ln1_w"].T                  # scale input rows
    fc1_b = params["ln1_b"] @ params["fc1_w"] + params["fc1_b"]
    fc1 = jnp.concatenate([fc1_w, fc1_b], axis=0).astype(jnp.bfloat16)     # (E+1, H)

    # exact fusion of fc2 and the output Linear (no nonlinearity between them)
    wout_w = params["fc2_w"] @ params["out_w"]
    wout_b = params["fc2_b"] @ params["out_w"] + params["out_b"]
    wout = jnp.concatenate([wout_w, wout_b], axis=0).astype(jnp.bfloat16)  # (H+1, P)

    dft, idft = build_dft_matrices(n_var)                        # (2*Fp, N), (2*N, Fp), f32

    return dict(aff=aff.astype(jnp.float32),
                emb_w=params["emb_w"].astype(jnp.bfloat16),
                dft=dft, idft=idft, vece=vece, vbe=vbe, fc1=fc1, wout=wout)


# --------------------------------- host wrapper -----------------------------------
@jax.jit
def texfilter_forward(x_glbn, packed):
    """x_glbn: (G, L, B, N) — all groups stacked.  Returns (G, P, B, N)."""
    G, L, B, N = x_glbn.shape
    E = packed["emb_w"].shape[1]
    H = packed["wout"].shape[0] - 1
    P = packed["wout"].shape[1]
    Fp = packed["idft"].shape[1]

    # rows ordered (b, n); time along the lane axis
    x2d = jnp.transpose(x_glbn, (0, 2, 3, 1)).reshape(G, B * N, L).astype(jnp.float32)

    out = pl.pallas_call(
        texfilter_kernel,
        out_shape=jax.ShapeDtypeStruct((G, B * N, P), jnp.float32),
        grid=(G,),
        in_specs=[
            pl.BlockSpec((None, B * N, L), lambda g: (g, 0, 0)),   # x (per group)
            pl.BlockSpec((None, B * N, 3), lambda g: (g, 0, 0)),   # RevIN affine table
            pl.BlockSpec((L, E), lambda g: (0, 0)),                # embedding weight (bf16)
            pl.BlockSpec((2 * Fp, N), lambda g: (0, 0)),           # forward DFT (f32)
            pl.BlockSpec((2 * N, Fp), lambda g: (0, 0)),           # inverse DFT halves (f32)
            pl.BlockSpec((3, E), lambda g: (0, 0)),                # emb_b / ln_w / ln_b
            pl.BlockSpec((8, B * E), lambda g: (0, 0)),            # filter params (lanes)
            pl.BlockSpec((E + 1, H), lambda g: (0, 0)),            # fc1 (LN1 affine folded)
            pl.BlockSpec((H + 1, P), lambda g: (0, 0)),            # fused fc2 @ output
        ],
        out_specs=pl.BlockSpec((None, B * N, P), lambda g: (g, 0, 0)),
        compiler_params=pltpu.CompilerParams(
            dimension_semantics=("parallel",)),                    # v7x: 2 TCs split groups
    )(x2d, packed["aff"], packed["emb_w"], packed["dft"], packed["idft"],
      packed["vece"], packed["vbe"], packed["fc1"], packed["wout"])

    return jnp.transpose(out.reshape(G, B, N, P), (0, 3, 1, 2))    # (G, P, B, N)


# --------------------------- pure-JAX reference (check) ---------------------------
def reference_forward(x_lbn, aff_w, aff_b, params):
    """Transcription of the PyTorch forward for one group.  x_lbn: (L, B, N)."""
    x = jnp.transpose(x_lbn, (1, 0, 2))                            # (B, L, N)
    n_var = x.shape[2]
    mean = jnp.mean(x, axis=1, keepdims=True)
    stdev = jnp.sqrt(jnp.var(x, axis=1, keepdims=True) + EPS)
    z = (x - mean) / stdev * aff_w + aff_b                         # RevIN 'norm'
    x = jnp.transpose(z, (0, 2, 1))                                # (B, N, L)
    x = x @ params["emb_w"] + params["emb_b"]                      # (B, N, E)

    def layernorm(v, w, b):
        mu = jnp.mean(v, axis=-1, keepdims=True)
        vr = jnp.mean((v - mu) ** 2, axis=-1, keepdims=True)
        return (v - mu) / jnp.sqrt(vr + LN_EPS) * w + b

    x = layernorm(x, params["ln_w"], params["ln_b"])
    xf = jnp.fft.rfft(x, axis=1, norm="ortho")                     # (B, F, E)
    w0, w1 = params["w"][0], params["w"][1]
    v0, v1 = params["w1"][0], params["w1"][1]
    o1r = jax.nn.relu(xf.real * w0 - xf.imag * w1 + params["rb1"])
    o1i = jax.nn.relu(xf.imag * w0 + xf.real * w1 + params["ib1"])
    o2r = o1r * v0 - o1i * v1 + params["rb2"]
    o2i = o1i * v0 + o1r * v1 + params["ib2"]
    ss = lambda y: jnp.where(y > LAMBDA, y - LAMBDA,
                             jnp.where(y < -LAMBDA, y + LAMBDA, 0.0))
    weight = ss(o2r) + 1j * ss(o2i)
    xf = xf * weight
    x = jnp.fft.irfft(xf, n=n_var, axis=1, norm="ortho")           # (B, N, E)
    x = layernorm(x, params["ln1_w"], params["ln1_b"])
    h = x @ params["fc1_w"] + params["fc1_b"]
    h = jnp.where(h >= 0, h, LEAKY * h)
    x = h @ params["fc2_w"] + params["fc2_b"]
    x = x @ params["out_w"] + params["out_b"]                      # (B, N, P)
    x = jnp.transpose(x, (0, 2, 1))                                # (B, P, N)
    x = (x - aff_b) / (aff_w + EPS * EPS) * stdev + mean           # RevIN 'denorm'
    return jnp.transpose(x, (1, 0, 2))                             # (P, B, N)


# ------------------------------- parameter init -----------------------------------
def init_params(key):
    ks = jax.random.split(key, 20)
    s = FILTER_SCALE

    def lin(kw, kb, fan_in, shape_w, shape_b):
        w = jax.random.normal(kw, shape_w, jnp.float32) / np.sqrt(fan_in)
        b = 0.02 * jax.random.normal(kb, shape_b, jnp.float32)
        return w, b

    p = {}
    # per-group RevIN affine (torch inits ones/zeros; perturbed so the affine path is
    # exercised in this synthetic test)
    p["aff_w"] = 1.0 + 0.1 * jax.random.normal(ks[14], (N_GROUPS, N_FEAT), jnp.float32)
    p["aff_b"] = 0.05 * jax.random.normal(ks[15], (N_GROUPS, N_FEAT), jnp.float32)
    p["emb_w"], p["emb_b"] = lin(ks[0], ks[1], SEQ_LEN, (SEQ_LEN, EMBED), (1, EMBED))
    p["ln_w"] = 1.0 + 0.1 * jax.random.normal(ks[16], (1, EMBED), jnp.float32)
    p["ln_b"] = 0.05 * jax.random.normal(ks[17], (1, EMBED), jnp.float32)
    p["w"] = s * jax.random.normal(ks[2], (2, EMBED), jnp.float32)
    p["w1"] = s * jax.random.normal(ks[3], (2, EMBED), jnp.float32)
    p["rb1"] = s * jax.random.normal(ks[4], (1, EMBED), jnp.float32)
    p["ib1"] = s * jax.random.normal(ks[5], (1, EMBED), jnp.float32)
    p["rb2"] = s * jax.random.normal(ks[6], (1, EMBED), jnp.float32)
    p["ib2"] = s * jax.random.normal(ks[7], (1, EMBED), jnp.float32)
    p["ln1_w"] = 1.0 + 0.1 * jax.random.normal(ks[18], (1, EMBED), jnp.float32)
    p["ln1_b"] = 0.05 * jax.random.normal(ks[19], (1, EMBED), jnp.float32)
    p["fc1_w"], p["fc1_b"] = lin(ks[8], ks[9], EMBED, (EMBED, HIDDEN), (1, HIDDEN))
    p["fc2_w"], p["fc2_b"] = lin(ks[10], ks[11], HIDDEN, (HIDDEN, EMBED), (1, EMBED))
    p["out_w"], p["out_b"] = lin(ks[12], ks[13], EMBED, (EMBED, PRED_LEN), (1, PRED_LEN))
    return p


# ------------------------------------ main -----------------------------------------
if __name__ == "__main__":
    key = jax.random.PRNGKey(0)
    kx, kp = jax.random.split(key)
    params = init_params(kp)

    # x_list with N_GROUPS groups; each element is (L, B, N) like the PyTorch module.
    xkeys = jax.random.split(kx, N_GROUPS)
    x_list = [jax.random.normal(k, (SEQ_LEN, BATCH, N_FEAT), jnp.float32) for k in xkeys]

    # One-time parameter packing (hoisted out of the per-call path).
    packed = prepare_packed(params, BATCH, N_FEAT)

    # Single gridded pallas_call over all groups.
    x_stacked = jnp.stack(x_list, axis=0)                           # (G, L, B, N)
    pred = jax.block_until_ready(texfilter_forward(x_stacked, packed))   # (G, P, B, N)
    pred_list = [pred[g] for g in range(N_GROUPS)]

    # pure-JAX reference check (per group)
    for g in range(N_GROUPS):
        ref = reference_forward(x_list[g], params["aff_w"][g], params["aff_b"][g], params)
        out_g = pred_list[g]
        assert out_g.shape == (PRED_LEN, BATCH, N_FEAT)
        assert bool(jnp.all(jnp.isfinite(out_g)))
        # bf16 MXU operands (emb/fc1/output) with f32 accumulation vs. f32 reference
        np.testing.assert_allclose(np.asarray(out_g), np.asarray(ref),
                                   rtol=5e-2, atol=5e-2)

    print("KERNEL_OK")
</pallas_src>

<mosaic_0001>
module attributes {stable_mosaic.version = 11 : i64} {
  func.func @texfilter_kernel(%arg0: i32, %arg1: memref<1x32x8xf32, #tpu.memory_space<vmem>>, %arg2: memref<1x32x3xf32, #tpu.memory_space<vmem>>, %arg3: memref<8x32xbf16, #tpu.memory_space<vmem>>, %arg4: memref<32x16xf32, #tpu.memory_space<vmem>>, %arg5: memref<32x16xf32, #tpu.memory_space<vmem>>, %arg6: memref<3x32xf32, #tpu.memory_space<vmem>>, %arg7: memref<8x64xf32, #tpu.memory_space<vmem>>, %arg8: memref<33x32xbf16, #tpu.memory_space<vmem>>, %arg9: memref<33x4xbf16, #tpu.memory_space<vmem>>, %arg10: memref<1x32x4xf32, #tpu.memory_space<vmem>>) attributes {dimension_semantics = [#tpu.dimension_semantics<parallel>], iteration_bounds = array<i64: 2>, scalar_prefetch = 0 : i64, scratch_operands = 0 : i64, tpu.core_type = #tpu.core_type<tc>, window_params = [{transform_indices = @transform_0, window_bounds = array<i64: 1, 32, 8>}, {transform_indices = @transform_1, window_bounds = array<i64: 1, 32, 3>}, {pipeline_mode = #tpu.pipeline_mode<synchronous>, transform_indices = @transform_2, window_bounds = array<i64: 8, 32>}, {pipeline_mode = #tpu.pipeline_mode<synchronous>, transform_indices = @transform_3, window_bounds = array<i64: 32, 16>}, {pipeline_mode = #tpu.pipeline_mode<synchronous>, transform_indices = @transform_4, window_bounds = array<i64: 32, 16>}, {pipeline_mode = #tpu.pipeline_mode<synchronous>, transform_indices = @transform_5, window_bounds = array<i64: 3, 32>}, {pipeline_mode = #tpu.pipeline_mode<synchronous>, transform_indices = @transform_6, window_bounds = array<i64: 8, 64>}, {pipeline_mode = #tpu.pipeline_mode<synchronous>, transform_indices = @transform_7, window_bounds = array<i64: 33, 32>}, {pipeline_mode = #tpu.pipeline_mode<synchronous>, transform_indices = @transform_8, window_bounds = array<i64: 33, 4>}, {transform_indices = @transform_9, window_bounds = array<i64: 1, 32, 4>}]} {
    %c0 = arith.constant 0 : index
    %c0_0 = arith.constant 0 : index
    %c0_1 = arith.constant 0 : index
    %0 = vector.load %arg1[%c0, %c0_0, %c0_1] : memref<1x32x8xf32, #tpu.memory_space<vmem>>, vector<1x32x8xf32>
    %1 = vector.shape_cast %0 : vector<1x32x8xf32> to vector<32x8xf32>
    %c0_2 = arith.constant 0 : index
    %c0_3 = arith.constant 0 : index
    %c0_4 = arith.constant 0 : index
    %2 = vector.load %arg2[%c0_2, %c0_3, %c0_4] : memref<1x32x3xf32, #tpu.memory_space<vmem>>, vector<1x32x1xf32>
    %3 = vector.shape_cast %2 : vector<1x32x1xf32> to vector<32x1xf32>
    %c0_5 = arith.constant 0 : index
    %c0_6 = arith.constant 0 : index
    %c1 = arith.constant 1 : index
    %4 = vector.load %arg2[%c0_5, %c0_6, %c1] : memref<1x32x3xf32, #tpu.memory_space<vmem>>, vector<1x32x1xf32>
    %5 = vector.shape_cast %4 : vector<1x32x1xf32> to vector<32x1xf32>
    %c0_7 = arith.constant 0 : index
    %c0_8 = arith.constant 0 : index
    %c2 = arith.constant 2 : index
    %6 = vector.load %arg2[%c0_7, %c0_8, %c2] : memref<1x32x3xf32, #tpu.memory_space<vmem>>, vector<1x32x1xf32>
    %7 = vector.shape_cast %6 : vector<1x32x1xf32> to vector<32x1xf32>
    %cst = arith.constant dense<0.000000e+00> : vector<32xf32>
    %8 = vector.multi_reduction <add>, %1, %cst [1] : vector<32x8xf32> to vector<32xf32>
    %9 = vector.shape_cast %8 : vector<32xf32> to vector<32x1xf32>
    %cst_9 = arith.constant 8.000000e+00 : f32
    %10 = vector.broadcast %cst_9 : f32 to vector<32x1xf32>
    %11 = arith.divf %9, %10 : vector<32x1xf32>
    %12 = vector.broadcast %11 : vector<32x1xf32> to vector<32x8xf32>
    %13 = arith.subf %1, %12 : vector<32x8xf32>
    %14 = arith.mulf %13, %13 : vector<32x8xf32>
    %cst_10 = arith.constant dense<0.000000e+00> : vector<32xf32>
    %15 = vector.multi_reduction <add>, %14, %cst_10 [1] : vector<32x8xf32> to vector<32xf32>
    %16 = vector.shape_cast %15 : vector<32xf32> to vector<32x1xf32>
    %cst_11 = arith.constant 8.000000e+00 : f32
    %17 = vector.broadcast %cst_11 : f32 to vector<32x1xf32>
    %18 = arith.divf %16, %17 : vector<32x1xf32>
    %cst_12 = arith.constant 9.99999974E-6 : f32
    %19 = vector.broadcast %cst_12 : f32 to vector<32x1xf32>
    %20 = arith.addf %18, %19 : vector<32x1xf32>
    %21 = math.rsqrt %20 : vector<32x1xf32>
    %22 = arith.mulf %20, %21 : vector<32x1xf32>
    %23 = vector.broadcast %11 : vector<32x1xf32> to vector<32x8xf32>
    %24 = arith.subf %1, %23 : vector<32x8xf32>
    %25 = vector.broadcast %21 : vector<32x1xf32> to vector<32x8xf32>
    %26 = arith.mulf %24, %25 : vector<32x8xf32>
    %27 = vector.broadcast %3 : vector<32x1xf32> to vector<32x8xf32>
    %28 = arith.mulf %26, %27 : vector<32x8xf32>
    %29 = vector.broadcast %5 : vector<32x1xf32> to vector<32x8xf32>
    %30 = arith.addf %28, %29 : vector<32x8xf32>
    %c0_13 = arith.constant 0 : index
    %c0_14 = arith.constant 0 : index
    %31 = vector.load %arg6[%c0_13, %c0_14] : memref<3x32xf32, #tpu.memory_space<vmem>>, vector<1x32xf32>
    %c1_15 = arith.constant 1 : index
    %c0_16 = arith.constant 0 : index
    %32 = vector.load %arg6[%c1_15, %c0_16] : memref<3x32xf32, #tpu.memory_space<vmem>>, vector<1x32xf32>
    %c2_17 = arith.constant 2 : index
    %c0_18 = arith.constant 0 : index
    %33 = vector.load %arg6[%c2_17, %c0_18] : memref<3x32xf32, #tpu.memory_space<vmem>>, vector<1x32xf32>
    %34 = arith.truncf %30 : vector<32x8xf32> to vector<32x8xbf16>
    %c0_19 = arith.constant 0 : index
    %c0_20 = arith.constant 0 : index
    %35 = vector.load %arg3[%c0_19, %c0_20] : memref<8x32xbf16, #tpu.memory_space<vmem>>, vector<8x32xbf16>
    %cst_21 = arith.constant dense<0.000000e+00> : vector<32x32xf32>
    %36 = tpu.matmul %34, %35, %cst_21 {dimension_numbers = #tpu.dot_dimension_numbers<[1], [0], [0], [1], [0, 0, 1, 1], [], []>} : vector<32x8xbf16>, vector<8x32xbf16>, vector<32x32xf32> -> vector<32x32xf32>
    %37 = vector.broadcast %31 : vector<1x32xf32> to vector<32x32xf32>
    %38 = arith.addf %36, %37 : vector<32x32xf32>
    %cst_22 = arith.constant dense<0.000000e+00> : vector<32xf32>
    %39 = vector.multi_reduction <add>, %38, %cst_22 [1] : vector<32x32xf32> to vector<32xf32>
    %40 = vector.shape_cast %39 : vector<32xf32> to vector<32x1xf32>
    %cst_23 = arith.constant 3.200000e+01 : f32
    %41 = vector.broadcast %cst_23 : f32 to vector<32x1xf32>
    %42 = arith.divf %40, %41 : vector<32x1xf32>
    %43 = vector.broadcast %42 : vector<32x1xf32> to vector<32x32xf32>
    %44 = arith.subf %38, %43 : vector<32x32xf32>
    %45 = arith.mulf %44, %44 : vector<32x32xf32>
    %cst_24 = arith.constant dense<0.000000e+00> : vector<32xf32>
    %46 = vector.multi_reduction <add>, %45, %cst_24 [1] : vector<32x32xf32> to vector<32xf32>
    %47 = vector.shape_cast %46 : vector<32xf32> to vector<32x1xf32>
    %cst_25 = arith.constant 3.200000e+01 : f32
    %48 = vector.broadcast %cst_25 : f32 to vector<32x1xf32>
    %49 = arith.divf %47, %48 : vector<32x1xf32>
    %50 = vector.broadcast %42 : vector<32x1xf32> to vector<32x32xf32>
    %51 = arith.subf %38, %50 : vector<32x32xf32>
    %cst_26 = arith.constant 9.99999974E-6 : f32
    %52 = vector.broadcast %cst_26 : f32 to vector<32x1xf32>
    %53 = arith.addf %49, %52 : vector<32x1xf32>
    %54 = math.rsqrt %53 : vector<32x1xf32>
    %55 = vector.broadcast %54 : vector<32x1xf32> to vector<32x32xf32>
    %56 = arith.mulf %51, %55 : vector<32x32xf32>
    %57 = vector.broadcast %32 : vector<1x32xf32> to vector<32x32xf32>
    %58 = arith.mulf %56, %57 : vector<32x32xf32>
    %59 = vector.broadcast %33 : vector<1x32xf32> to vector<32x32xf32>
    %60 = arith.addf %58, %59 : vector<32x32xf32>
    %61 = vector.extract_strided_slice %60 {offsets = [0, 0], sizes = [16, 32], strides = [1, 1]} : vector<32x32xf32> to vector<16x32xf32>
    %62 = vector.extract_strided_slice %60 {offsets = [16, 0], sizes = [16, 32], strides = [1, 1]} : vector<32x32xf32> to vector<16x32xf32>
    %63 = tpu.concatenate %61, %62 in 1 : vector<16x32xf32>, vector<16x32xf32> -> vector<16x64xf32>
    %c0_27 = arith.constant 0 : index
    %c0_28 = arith.constant 0 : index
    %64 = vector.load %arg4[%c0_27, %c0_28] : memref<32x16xf32, #tpu.memory_space<vmem>>, vector<32x16xf32>
    %cst_29 = arith.constant dense<0.000000e+00> : vector<32x64xf32>
    %65 = tpu.matmul %64, %63, %cst_29 {dimension_numbers = #tpu.dot_dimension_numbers<[1], [0], [0], [1], [0, 0, 1, 1], [], []>} : vector<32x16xf32>, vector<16x64xf32>, vector<32x64xf32> -> vector<32x64xf32>
    %66 = vector.extract_strided_slice %65 {offsets = [0, 0], sizes = [16, 64], strides = [1, 1]} : vector<32x64xf32> to vector<16x64xf32>
    %67 = vector.extract_strided_slice %65 {offsets = [16, 0], sizes = [16, 64], strides = [1, 1]} : vector<32x64xf32> to vector<16x64xf32>
    %c0_30 = arith.constant 0 : index
    %c0_31 = arith.constant 0 : index
    %68 = vector.load %arg7[%c0_30, %c0_31] : memref<8x64xf32, #tpu.memory_space<vmem>>, vector<1x64xf32>
    %c1_32 = arith.constant 1 : index
    %c0_33 = arith.constant 0 : index
    %69 = vector.load %arg7[%c1_32, %c0_33] : memref<8x64xf32, #tpu.memory_space<vmem>>, vector<1x64xf32>
    %c2_34 = arith.constant 2 : index
    %c0_35 = arith.constant 0 : index
    %70 = vector.load %arg7[%c2_34, %c0_35] : memref<8x64xf32, #tpu.memory_space<vmem>>, vector<1x64xf32>
    %c3 = arith.constant 3 : index
    %c0_36 = arith.constant 0 : index
    %71 = vector.load %arg7[%c3, %c0_36] : memref<8x64xf32, #tpu.memory_space<vmem>>, vector<1x64xf32>
    %c4 = arith.constant 4 : index
    %c0_37 = arith.constant 0 : index
    %72 = vector.load %arg7[%c4, %c0_37] : memref<8x64xf32, #tpu.memory_space<vmem>>, vector<1x64xf32>
    %c5 = arith.constant 5 : index
    %c0_38 = arith.constant 0 : index
    %73 = vector.load %arg7[%c5, %c0_38] : memref<8x64xf32, #tpu.memory_space<vmem>>, vector<1x64xf32>
    %c6 = arith.constant 6 : index
    %c0_39 = arith.constant 0 : index
    %74 = vector.load %arg7[%c6, %c0_39] : memref<8x64xf32, #tpu.memory_space<vmem>>, vector<1x64xf32>
    %c7 = arith.constant 7 : index
    %c0_40 = arith.constant 0 : index
    %75 = vector.load %arg7[%c7, %c0_40] : memref<8x64xf32, #tpu.memory_space<vmem>>, vector<1x64xf32>
    %76 = vector.broadcast %68 : vector<1x64xf32> to vector<16x64xf32>
    %77 = arith.mulf %66, %76 : vector<16x64xf32>
    %78 = vector.broadcast %69 : vector<1x64xf32> to vector<16x64xf32>
    %79 = arith.mulf %67, %78 : vector<16x64xf32>
    %80 = arith.subf %77, %79 : vector<16x64xf32>
    %81 = vector.broadcast %72 : vector<1x64xf32> to vector<16x64xf32>
    %82 = arith.addf %80, %81 : vector<16x64xf32>
    %cst_41 = arith.constant 0.000000e+00 : f32
    %83 = vector.broadcast %cst_41 : f32 to vector<16x64xf32>
    %84 = arith.maximumf %82, %83 : vector<16x64xf32>
    %85 = vector.broadcast %68 : vector<1x64xf32> to vector<16x64xf32>
    %86 = arith.mulf %67, %85 : vector<16x64xf32>
    %87 = vector.broadcast %69 : vector<1x64xf32> to vector<16x64xf32>
    %88 = arith.mulf %66, %87 : vector<16x64xf32>
    %89 = arith.addf %86, %88 : vector<16x64xf32>
    %90 = vector.broadcast %73 : vector<1x64xf32> to vector<16x64xf32>
    %91 = arith.addf %89, %90 : vector<16x64xf32>
    %cst_42 = arith.constant 0.000000e+00 : f32
    %92 = vector.broadcast %cst_42 : f32 to vector<16x64xf32>
    %93 = arith.maximumf %91, %92 : vector<16x64xf32>
    %94 = vector.broadcast %70 : vector<1x64xf32> to vector<16x64xf32>
    %95 = arith.mulf %84, %94 : vector<16x64xf32>
    %96 = vector.broadcast %71 : vector<1x64xf32> to vector<16x64xf32>
    %97 = arith.mulf %93, %96 : vector<16x64xf32>
    %98 = arith.subf %95, %97 : vector<16x64xf32>
    %99 = vector.broadcast %74 : vector<1x64xf32> to vector<16x64xf32>
    %100 = arith.addf %98, %99 : vector<16x64xf32>
    %101 = vector.broadcast %70 : vector<1x64xf32> to vector<16x64xf32>
    %102 = arith.mulf %93, %101 : vector<16x64xf32>
    %103 = vector.broadcast %71 : vector<1x64xf32> to vector<16x64xf32>
    %104 = arith.mulf %84, %103 : vector<16x64xf32>
    %105 = arith.addf %102, %104 : vector<16x64xf32>
    %106 = vector.broadcast %75 : vector<1x64xf32> to vector<16x64xf32>
    %107 = arith.addf %105, %106 : vector<16x64xf32>
    %cst_43 = arith.constant 0.00999999977 : f32
    %108 = vector.broadcast %cst_43 : f32 to vector<16x64xf32>
    %109 = arith.cmpf ogt, %100, %108 : vector<16x64xf32>
    %cst_44 = arith.constant 0.00999999977 : f32
    %110 = vector.broadcast %cst_44 : f32 to vector<16x64xf32>
    %111 = arith.subf %100, %110 : vector<16x64xf32>
    %cst_45 = arith.constant -0.00999999977 : f32
    %112 = vector.broadcast %cst_45 : f32 to vector<16x64xf32>
    %113 = arith.cmpf olt, %100, %112 : vector<16x64xf32>
    %cst_46 = arith.constant 0.00999999977 : f32
    %114 = vector.broadcast %cst_46 : f32 to vector<16x64xf32>
    %115 = arith.addf %100, %114 : vector<16x64xf32>
    %cst_47 = arith.constant 0.000000e+00 : f32
    %116 = vector.broadcast %cst_47 : f32 to vector<16x64xf32>
    %117 = arith.select %113, %115, %116 : vector<16x64xi1>, vector<16x64xf32>
    %118 = arith.select %109, %111, %117 : vector<16x64xi1>, vector<16x64xf32>
    %cst_48 = arith.constant 0.00999999977 : f32
    %119 = vector.broadcast %cst_48 : f32 to vector<16x64xf32>
    %120 = arith.cmpf ogt, %107, %119 : vector<16x64xf32>
    %cst_49 = arith.constant 0.00999999977 : f32
    %121 = vector.broadcast %cst_49 : f32 to vector<16x64xf32>
    %122 = arith.subf %107, %121 : vector<16x64xf32>
    %cst_50 = arith.constant -0.00999999977 : f32
    %123 = vector.broadcast %cst_50 : f32 to vector<16x64xf32>
    %124 = arith.cmpf olt, %107, %123 : vector<16x64xf32>
    %cst_51 = arith.constant 0.00999999977 : f32
    %125 = vector.broadcast %cst_51 : f32 to vector<16x64xf32>
    %126 = arith.addf %107, %125 : vector<16x64xf32>
    %cst_52 = arith.constant 0.000000e+00 : f32
    %127 = vector.broadcast %cst_52 : f32 to vector<16x64xf32>
    %128 = arith.select %124, %126, %127 : vector<16x64xi1>, vector<16x64xf32>
    %129 = arith.select %120, %122, %128 : vector<16x64xi1>, vector<16x64xf32>
    %130 = arith.mulf %66, %118 : vector<16x64xf32>
    %131 = arith.mulf %67, %129 : vector<16x64xf32>
    %132 = arith.subf %130, %131 : vector<16x64xf32>
    %133 = arith.mulf %66, %129 : vector<16x64xf32>
    %134 = arith.mulf %67, %118 : vector<16x64xf32>
    %135 = arith.addf %133, %134 : vector<16x64xf32>
    %c0_53 = arith.constant 0 : index
    %c0_54 = arith.constant 0 : index
    %136 = vector.load %arg5[%c0_53, %c0_54] : memref<32x16xf32, #tpu.memory_space<vmem>>, vector<16x16xf32>
    %cst_55 = arith.constant dense<0.000000e+00> : vector<16x64xf32>
    %137 = tpu.matmul %136, %132, %cst_55 {dimension_numbers = #tpu.dot_dimension_numbers<[1], [0], [0], [1], [0, 0, 1, 1], [], []>} : vector<16x16xf32>, vector<16x64xf32>, vector<16x64xf32> -> vector<16x64xf32>
    %c16 = arith.constant 16 : index
    %c0_56 = arith.constant 0 : index
    %138 = vector.load %arg5[%c16, %c0_56] : memref<32x16xf32, #tpu.memory_space<vmem>>, vector<16x16xf32>
    %cst_57 = arith.constant dense<0.000000e+00> : vector<16x64xf32>
    %139 = tpu.matmul %138, %135, %cst_57 {dimension_numbers = #tpu.dot_dimension_numbers<[1], [0], [0], [1], [0, 0, 1, 1], [], []>} : vector<16x16xf32>, vector<16x64xf32>, vector<16x64xf32> -> vector<16x64xf32>
    %140 = arith.addf %137, %139 : vector<16x64xf32>
    %141 = vector.extract_strided_slice %140 {offsets = [0, 0], sizes = [16, 32], strides = [1, 1]} : vector<16x64xf32> to vector<16x32xf32>
    %142 = vector.extract_strided_slice %140 {offsets = [0, 32], sizes = [16, 32], strides = [1, 1]} : vector<16x64xf32> to vector<16x32xf32>
    %143 = tpu.concatenate %141, %142 in 0 : vector<16x32xf32>, vector<16x32xf32> -> vector<32x32xf32>
    %cst_58 = arith.constant dense<0.000000e+00> : vector<32xf32>
    %144 = vector.multi_reduction <add>, %143, %cst_58 [1] : vector<32x32xf32> to vector<32xf32>
    %145 = vector.shape_cast %144 : vector<32xf32> to vector<32x1xf32>
    %cst_59 = arith.constant 3.200000e+01 : f32
    %146 = vector.broadcast %cst_59 : f32 to vector<32x1xf32>
    %147 = arith.divf %145, %146 : vector<32x1xf32>
    %148 = vector.broadcast %147 : vector<32x1xf32> to vector<32x32xf32>
    %149 = arith.subf %143, %148 : vector<32x32xf32>
    %150 = arith.mulf %149, %149 : vector<32x32xf32>
    %cst_60 = arith.constant dense<0.000000e+00> : vector<32xf32>
    %151 = vector.multi_reduction <add>, %150, %cst_60 [1] : vector<32x32xf32> to vector<32xf32>
    %152 = vector.shape_cast %151 : vector<32xf32> to vector<32x1xf32>
    %cst_61 = arith.constant 3.200000e+01 : f32
    %153 = vector.broadcast %cst_61 : f32 to vector<32x1xf32>
    %154 = arith.divf %152, %153 : vector<32x1xf32>
    %155 = vector.broadcast %147 : vector<32x1xf32> to vector<32x32xf32>
    %156 = arith.subf %143, %155 : vector<32x32xf32>
    %cst_62 = arith.constant 9.99999974E-6 : f32
    %157 = vector.broadcast %cst_62 : f32 to vector<32x1xf32>
    %158 = arith.addf %154, %157 : vector<32x1xf32>
    %159 = math.rsqrt %158 : vector<32x1xf32>
    %160 = vector.broadcast %159 : vector<32x1xf32> to vector<32x32xf32>
    %161 = arith.mulf %156, %160 : vector<32x32xf32>
    %162 = arith.truncf %161 : vector<32x32xf32> to vector<32x32xbf16>
    %c0_63 = arith.constant 0 : index
    %c0_64 = arith.constant 0 : index
    %163 = vector.load %arg8[%c0_63, %c0_64] : memref<33x32xbf16, #tpu.memory_space<vmem>>, vector<32x32xbf16>
    %cst_65 = arith.constant dense<0.000000e+00> : vector<32x32xf32>
    %164 = tpu.matmul %162, %163, %cst_65 {dimension_numbers = #tpu.dot_dimension_numbers<[1], [0], [0], [1], [0, 0, 1, 1], [], []>} : vector<32x32xbf16>, vector<32x32xbf16>, vector<32x32xf32> -> vector<32x32xf32>
    %c32 = arith.constant 32 : index
    %c0_66 = arith.constant 0 : index
    %165 = vector.load %arg8[%c32, %c0_66] : memref<33x32xbf16, #tpu.memory_space<vmem>>, vector<1x32xbf16>
    %166 = arith.extf %165 : vector<1x32xbf16> to vector<1x32xf32>
    %167 = vector.broadcast %166 : vector<1x32xf32> to vector<32x32xf32>
    %168 = arith.addf %164, %167 : vector<32x32xf32>
    %cst_67 = arith.constant 0.000000e+00 : f32
    %169 = vector.broadcast %cst_67 : f32 to vector<32x32xf32>
    %170 = arith.cmpf oge, %168, %169 : vector<32x32xf32>
    %cst_68 = arith.constant 0.00999999977 : f32
    %171 = vector.broadcast %cst_68 : f32 to vector<32x32xf32>
    %172 = arith.mulf %171, %168 : vector<32x32xf32>
    %173 = arith.select %170, %168, %172 : vector<32x32xi1>, vector<32x32xf32>
    %174 = arith.truncf %173 : vector<32x32xf32> to vector<32x32xbf16>
    %c0_69 = arith.constant 0 : index
    %c0_70 = arith.constant 0 : index
    %175 = vector.load %arg9[%c0_69, %c0_70] : memref<33x4xbf16, #tpu.memory_space<vmem>>, vector<32x4xbf16>
    %cst_71 = arith.constant dense<0.000000e+00> : vector<32x4xf32>
    %176 = tpu.matmul %174, %175, %cst_71 {dimension_numbers = #tpu.dot_dimension_numbers<[1], [0], [0], [1], [0, 0, 1, 1], [], []>} : vector<32x32xbf16>, vector<32x4xbf16>, vector<32x4xf32> -> vector<32x4xf32>
    %c32_72 = arith.constant 32 : index
    %c0_73 = arith.constant 0 : index
    %177 = vector.load %arg9[%c32_72, %c0_73] : memref<33x4xbf16, #tpu.memory_space<vmem>>, vector<1x4xbf16>
    %178 = arith.extf %177 : vector<1x4xbf16> to vector<1x4xf32>
    %179 = vector.broadcast %178 : vector<1x4xf32> to vector<32x4xf32>
    %180 = arith.addf %176, %179 : vector<32x4xf32>
    %181 = vector.broadcast %5 : vector<32x1xf32> to vector<32x4xf32>
    %182 = arith.subf %180, %181 : vector<32x4xf32>
    %183 = vector.broadcast %7 : vector<32x1xf32> to vector<32x4xf32>
    %184 = arith.mulf %182, %183 : vector<32x4xf32>
    %185 = vector.broadcast %22 : vector<32x1xf32> to vector<32x4xf32>
    %186 = arith.mulf %184, %185 : vector<32x4xf32>
    %187 = vector.broadcast %11 : vector<32x1xf32> to vector<32x4xf32>
    %188 = arith.addf %186, %187 : vector<32x4xf32>
    %c0_74 = arith.constant 0 : index
    %c0_75 = arith.constant 0 : index
    %c0_76 = arith.constant 0 : index
    %189 = vector.load %arg10[%c0_74, %c0_75, %c0_76] : memref<1x32x4xf32, #tpu.memory_space<vmem>>, vector<1x32x4xf32>
    %190 = vector.shape_cast %189 : vector<1x32x4xf32> to vector<32x4xf32>
    %191 = vector.shape_cast %188 : vector<32x4xf32> to vector<1x32x4xf32>
    tpu.vector_store %arg10[%c0_74, %c0_75, %c0_76], %191 {strides = array<i32>} : memref<1x32x4xf32, #tpu.memory_space<vmem>>, vector<1x32x4xf32>,
    return
  }
  func.func @transform_0(%arg0: i32) -> (i32, i32, i32) {
    %c0_i32 = arith.constant 0 : i32
    %c0_i32_0 = arith.constant 0 : i32
    %c0_i32_1 = arith.constant 0 : i32
    return %arg0, %c0_i32, %c0_i32_0 : i32, i32, i32
  }
  func.func @transform_1(%arg0: i32) -> (i32, i32, i32) {
    %c0_i32 = arith.constant 0 : i32
    %c0_i32_0 = arith.constant 0 : i32
    %c0_i32_1 = arith.constant 0 : i32
    return %arg0, %c0_i32, %c0_i32_0 : i32, i32, i32
  }
  func.func @transform_2(%arg0: i32) -> (i32, i32) {
    %c0_i32 = arith.constant 0 : i32
    %c0_i32_0 = arith.constant 0 : i32
    %c0_i32_1 = arith.constant 0 : i32
    return %c0_i32, %c0_i32_0 : i32, i32
  }
  func.func @transform_3(%arg0: i32) -> (i32, i32) {
    %c0_i32 = arith.constant 0 : i32
    %c0_i32_0 = arith.constant 0 : i32
    %c0_i32_1 = arith.constant 0 : i32
    return %c0_i32, %c0_i32_0 : i32, i32
  }
  func.func @transform_4(%arg0: i32) -> (i32, i32) {
    %c0_i32 = arith.constant 0 : i32
    %c0_i32_0 = arith.constant 0 : i32
    %c0_i32_1 = arith.constant 0 : i32
    return %c0_i32, %c0_i32_0 : i32, i32
  }
  func.func @transform_5(%arg0: i32) -> (i32, i32) {
    %c0_i32 = arith.constant 0 : i32
    %c0_i32_0 = arith.constant 0 : i32
    %c0_i32_1 = arith.constant 0 : i32
    return %c0_i32, %c0_i32_0 : i32, i32
  }
  func.func @transform_6(%arg0: i32) -> (i32, i32) {
    %c0_i32 = arith.constant 0 : i32
    %c0_i32_0 = arith.constant 0 : i32
    %c0_i32_1 = arith.constant 0 : i32
    return %c0_i32, %c0_i32_0 : i32, i32
  }
  func.func @transform_7(%arg0: i32) -> (i32, i32) {
    %c0_i32 = arith.constant 0 : i32
    %c0_i32_0 = arith.constant 0 : i32
    %c0_i32_1 = arith.constant 0 : i32
    return %c0_i32, %c0_i32_0 : i32, i32
  }
  func.func @transform_8(%arg0: i32) -> (i32, i32) {
    %c0_i32 = arith.constant 0 : i32
    %c0_i32_0 = arith.constant 0 : i32
    %c0_i32_1 = arith.constant 0 : i32
    return %c0_i32, %c0_i32_0 : i32, i32
  }
  func.func @transform_9(%arg0: i32) -> (i32, i32, i32) {
    %c0_i32 = arith.constant 0 : i32
    %c0_i32_0 = arith.constant 0 : i32
    %c0_i32_1 = arith.constant 0 : i32
    return %arg0, %c0_i32, %c0_i32_0 : i32, i32, i32
  }
}

</mosaic_0001>

<bundles_post_ra>
// kernel: texfilter_forward.1
= control target key start
LH: loop header
LB: loop body
LE: loop exit
PB: predicated region body
PF: predicated region fallthrough
CT: control target
= control target key end

     0   :  { %s1351_s30 = smov 0   ;;  %s1659_s0 = inlined_call_operand.vmem [shape: f32[2,32,8], index: 0, kind: input, shape index: {}]   ;;  %s1660_s1 = inlined_call_operand.vmem [shape: f32[2,32,3], index: 1, kind: input, shape index: {}]   ;;  %s1661_s2 = inlined_call_operand.vmem [shape: bf16[8,32], index: 2, kind: input, shape index: {}]   ;;  %s1662_s3 = inlined_call_operand.vmem [shape: f32[32,16], index: 3, kind: input, shape index: {}]   ;;  %s1663_s4 = inlined_call_operand.vmem [shape: f32[32,16], index: 4, kind: input, shape index: {}]   ;;  %s1664_s5 = inlined_call_operand.vmem [shape: f32[3,32], index: 5, kind: input, shape index: {}]   ;;  %s1665_s6 = inlined_call_operand.vmem [shape: f32[8,64], index: 6, kind: input, shape index: {}]   ;;  %s1666_s7 = inlined_call_operand.vmem [shape: bf16[33,32], index: 7, kind: input, shape index: {}]   ;;  %s1667_s8 = inlined_call_operand.vmem [shape: bf16[33,4], index: 8, kind: input, shape index: {}]   ;;  %s1668_s9 = inlined_call_operand.vmem [shape: f32[2,32,4], index: 9, kind: output, shape index: {}]  }
   0x1 LB: > { %s1158_s10 = sadd.s32 4294967295, %s1292_s30   ;;  %p1162_p0 = scmp.ge.s32.totalorder %s1292_s30, 1  ;;  %s1292_s30 = sphi %s1351_s30, %s19_s30  }
   0x2   : > { %p297_p1 = scmp.lt.s32.totalorder %s1292_s30, 3 }
   0x4   : > { %p298_p2 = pnand %p1162_p0, %p297_p1 }
   0x5   : > { %p338_p3 = scmp.lt.s32.totalorder (!%p298_p2), %s1158_s10, 1  ;;  %s1298_s26 = smov (!%p298_p2), 32  }
   0x6   : > { %301 = sbr.rel (%p298_p2) target bundleno = 1829 (0x725), region = 56  ;;  %s1299_s21 = smov (!%p298_p2), 96  }
   0xb   : > { %v1294_v0 = vmov 1   ;;  %s1670_s10 = smov (!%p338_p3, %s1158_s10), 1  ;;  %vm362_vm0 = vcmask 64512   ;;  %v1295_v8 = vmov 0   ;;  %v1296_v12 = vmov 8.0  }
   0xc   : > { %1233 = vset.pattern.permute.xlu1 %v1294_v0  ;;  %s1360_s11 = sshll.u32 %s1670_s10, 5  ;;  %1231 = vset.pattern.permute.xlu2 %v1295_v8  ;;  %1258 = vrcp.f32 %v1296_v12  ;;  %v511_v50 = vld [vmem:[%s1661_s2] sm:$0xf]  ;;  %vm519_vm2 = vcmask 1043456   ;;  %vm542_vm15 = vcmask 261120  }
   0xd   : > { %s342_s14 = scalar_lea.vmem %s1659_s0, %s1360_s11  ;;  %s1372_s17 = scalar_lea.vmem %s1660_s1, %s1360_s11  ;;  %1232 = vset.pattern.permute.xlu0 %v1295_v8  ;;  %v521_v51 = vsel %vm519_vm2, %v511_v50, 0 }
   0xe   : > { %v356_v1 = vld [vmem:[%s342_s14 + $0x10] sm:$0xff]  ;;  %v354_v2 = vld [vmem:[%s342_s14] sm:$0xff]  ;;  %v357_v5 = vld [vmem:[%s342_s14 + $0x18] sm:$0xff]  ;;  %530 = vmatpush.bf16.msra.mxu0 %v521_v51 }
   0xf   : > { %v369_v3 = vsel %vm362_vm0, %v356_v1, 0.0  ;;  %v363_v4 = vsel %vm362_vm0, %v354_v2, 0.0  ;;  %v355_v6 = vld [vmem:[%s342_s14 + $0x8] sm:$0xff]  ;;  %v1375_v7 = vld [vmem:[%s1372_s17] sm:$0xff]  ;;  %v372_v9 = vsel %vm362_vm0, %v357_v5, 0.0  ;;  %v1383_v11 = vld [vmem:[%s1372_s17 + $0x18] sm:$0xff] }
  0x10   : > { %370 = vadd.xlane.f32.xlu1 %v369_v3  ;;  %364 = vadd.xlane.f32.xlu0 %v363_v4  ;;  %v366_v10 = vsel %vm362_vm0, %v355_v6, 0.0  ;;  %v1420_v39 = vld [vmem:[%s1372_s17 + $0x8] sm:$0xff]  ;;  %v1426_v40 = vld [vmem:[%s1372_s17 + $0x10] sm:$0xff]  ;;  %s352_s17 = scalar_lea.vmem %s1668_s9, %s1360_s11 }
  0x11   : > { %464 = vperm.xlu2 %1231, %v1375_v7  }
  0x12   : > { %v1259_v13 = vpop.eup %1258 }
  0x13   : > { %v376_v14 = vmul.f32 8.0, %v1259_v13  ;;  %vm380_vm1 = vweird.f32 %v1259_v13 }
  0x15   : > { %v377_v15 = vsub.f32 1.0, %v376_v14 }
  0x17   : > { %v378_v16 = vmul.f32 %v1259_v13, %v377_v15 }
  0x18   : > { %373 = vadd.xlane.f32.xlu1 %v372_v9  ;;  %367 = vadd.xlane.f32.xlu0 %v366_v10 }
  0x19   : > { %1234 = vset.pattern.permute.xlu2 %v1294_v0  ;;  %v379_v17 = vadd.f32 %v1259_v13, %v378_v16 }
  0x1b   : > { %v381_v18 = vsel %vm380_vm1, %v1259_v13, %v379_v17 }
  0x31   : > { %487 = vperm.xlu1 %1233, %v1375_v7  }
  0x39   : > { %1236 = vset.pattern.permute.xlu1 %v1295_v8 }
  0x3a   : > { %479 = vperm.xlu1 %1236, %v1383_v11  }
  0x42   : > { %1238 = vset.pattern.permute.xlu1 %v1294_v0 }
  0x6b   : > { %v1433_v42 = vpop.permute.xlu2 %464 }
  0x83   : > { %v371_v19 = vpop.xlane.xlu1 %370  ;;  %v365_v20 = vpop.xlane.xlu0 %364 }
  0x84   : > { %v1387_v21 = vmul.f32 %v381_v18, %v371_v19  ;;  %v1389_v22 = vmul.f32 %v381_v18, %v365_v20 }
  0x86   : > { %v1392_v23 = vsub.f32 %v356_v1, %v1387_v21  ;;  %v1395_v24 = vsub.f32 %v354_v2, %v1389_v22 }
  0x88   : > { %v392_v25 = vmul.f32 %v1392_v23, %v1392_v23  ;;  %v390_v26 = vmul.f32 %v1395_v24, %v1395_v24 }
  0x8a   : > { %v400_v27 = vsel %vm362_vm0, %v392_v25, 0.0  ;;  %v394_v28 = vsel %vm362_vm0, %v390_v26, 0.0 }
  0x8b   : > { %v374_v29 = vpop.xlane.xlu1 %373  ;;  %401 = vadd.xlane.f32.xlu0 %v400_v27  ;;  %395 = vadd.xlane.f32.xlu2 %v394_v28  ;;  %v368_v30 = vpop.xlane.xlu0 %367 }
  0x8c   : > { %v1403_v31 = vmul.f32 %v381_v18, %v374_v29  ;;  %v1405_v32 = vmul.f32 %v381_v18, %v368_v30 }
  0x8e   : > { %v1408_v33 = vsub.f32 %v357_v5, %v1403_v31  ;;  %v1411_v34 = vsub.f32 %v355_v6, %v1405_v32 }
  0x90   : > { %v393_v35 = vmul.f32 %v1408_v33, %v1408_v33  ;;  %v391_v36 = vmul.f32 %v1411_v34, %v1411_v34 }
  0x92   : > { %v403_v37 = vsel %vm362_vm0, %v393_v35, 0.0  ;;  %v397_v38 = vsel %vm362_vm0, %v391_v36, 0.0 }
  0x93   : > { %404 = vadd.xlane.f32.xlu1 %v403_v37  ;;  %398 = vadd.xlane.f32.xlu2 %v397_v38 }
  0x9f   : > { %469 = vperm.xlu0 %1232, %v1420_v39  }
  0xa3   : > { %v1431_v41 = vpop.permute.xlu1 %487 }
  0xab   : > { %491 = vperm.xlu2 %1234, %v1420_v39  }
  0xac   : > { %499 = vperm.xlu1 %1238, %v1383_v11   ;;  %v1435_v43 = vpop.permute.xlu1 %479 }
  0xb3   : > { %1235 = vset.pattern.permute.xlu2 %v1295_v8 }
  0xb4   : > { %474 = vperm.xlu2 %1235, %v1426_v40  }
  0xbc   : > { %1237 = vset.pattern.permute.xlu2 %v1294_v0 }
  0xbd   : > { %495 = vperm.xlu2 %1237, %v1426_v40  }
  0xfe   : > { %v396_v44 = vpop.xlane.xlu2 %395  ;;  %v402_v45 = vpop.xlane.xlu0 %401 }
  0xff   : > { %v406_v46 = vmul.f32 %v396_v44, %v381_v18  ;;  %v408_v47 = vmul.f32 %v402_v45, %v381_v18 }
 0x101   : > { %v410_v48 = vadd.f32 1e-05, %v406_v46  ;;  %v412_v49 = vadd.f32 1e-05, %v408_v47 }
 0x103   : > { %1260 = vrsqrt.f32 %v410_v48  ;;  %vm440_vm4 = vweird.f32 %v412_v49  ;;  %vm420_vm6 = vweird.f32 %v410_v48 }
 0x104   : > { %1262 = vrsqrt.f32 %v412_v49 }
 0x106   : > { %v405_v52 = vpop.xlane.xlu1 %404  ;;  %v399_v53 = vpop.xlane.xlu2 %398 }
 0x107   : > { %v409_v54 = vmul.f32 %v405_v52, %v381_v18  ;;  %v407_v55 = vmul.f32 %v399_v53, %v381_v18 }
 0x109   : > { %v1261_v56 = vpop.eup %1260  ;;  %v413_v57 = vadd.f32 1e-05, %v409_v54  ;;  %v411_v58 = vadd.f32 1e-05, %v407_v55 }
 0x10a   : > { %v1263_v59 = vpop.eup %1262  ;;  %v415_v60 = vmul.f32 %v1261_v56, %v410_v48  ;;  %vm421_vm3 = vweird.f32 %v1261_v56 }
 0x10b   : > { %v435_v61 = vmul.f32 %v1263_v59, %v412_v49  ;;  %1264 = vrsqrt.f32 %v413_v57  ;;  %vm441_vm5 = vweird.f32 %v1263_v59  ;;  %vm422_vm7 = vmor %vm420_vm6, %vm421_vm3  ;;  %vm450_vm9 = vweird.f32 %v413_v57 }
 0x10c   : > { %v416_v62 = vmul.f32 %v1261_v56, %v415_v60  ;;  %1266 = vrsqrt.f32 %v411_v58  ;;  %vm442_vm8 = vmor %vm440_vm4, %vm441_vm5  ;;  %vm430_vm13 = vweird.f32 %v411_v58 }
 0x10d   : > { %v436_v63 = vmul.f32 %v1263_v59, %v435_v61 }
 0x10e   : > { %v417_v0 = vmul.f32 0.5, %v416_v62  ;;  %v1445_v28 = vpop.permute.xlu2 %491 }
 0x10f   : > { %v437_v1 = vmul.f32 0.5, %v436_v63 }
 0x110   : > { %v418_v2 = vsub.f32 1.5, %v417_v0 }
 0x111   : > { %v1265_v3 = vpop.eup %1264  ;;  %v438_v4 = vsub.f32 1.5, %v437_v1  ;;  %v470_v36 = vpop.permute.xlu0 %469 }
 0x112   : > { %v1267_v5 = vpop.eup %1266  ;;  %v419_v6 = vmul.f32 %v1261_v56, %v418_v2  ;;  %v445_v8 = vmul.f32 %v1265_v3, %v413_v57  ;;  %vm451_vm10 = vweird.f32 %v1265_v3 }
 0x113   : > { %v425_v9 = vmul.f32 %v1267_v5, %v411_v58  ;;  %v439_v10 = vmul.f32 %v1263_v59, %v438_v4  ;;  %vm431_vm11 = vweird.f32 %v1267_v5  ;;  %vm452_vm12 = vmor %vm450_vm9, %vm451_vm10 }
 0x114   : > { %v446_v12 = vmul.f32 %v1265_v3, %v445_v8  ;;  %v423_v13 = vsel %vm422_vm7, %v1261_v56, %v419_v6  ;;  %vm432_vm14 = vmor %vm430_vm13, %vm431_vm11  ;;  %vm662_vm13 = vcmask 130048  }
 0x115   : > { %v443_v14 = vsel %vm442_vm8, %v1263_v59, %v439_v10  ;;  %v426_v15 = vmul.f32 %v1267_v5, %v425_v9  ;;  %v1440_v16 = vmul.f32 %v423_v13, %v410_v48  ;;  %v458_v27 = vmul.f32 %v423_v13, %v1395_v24 }
 0x116   : > { %v447_v17 = vmul.f32 0.5, %v446_v12  ;;  %v1442_v18 = vmul.f32 %v443_v14, %v412_v49  ;;  %v475_v49 = vpop.permute.xlu2 %474  ;;  %v460_v51 = vmul.f32 %v443_v14, %v1392_v23 }
 0x117   : > { %v427_v19 = vmul.f32 0.5, %v426_v15  ;;  %v482_v44 = vmul.f32 %v1433_v42, %v458_v27 }
 0x118   : > { %v448_v20 = vsub.f32 1.5, %v447_v17  ;;  %v484_v53 = vmul.f32 %v475_v49, %v460_v51 }
 0x119   : > { %v428_v25 = vsub.f32 1.5, %v427_v19  ;;  %v502_v24 = vadd.f32 %v1431_v41, %v482_v44 }
 0x11a   : > { %v449_v26 = vmul.f32 %v1265_v3, %v448_v20 }
 0x11b   : > { %v429_v29 = vmul.f32 %v1267_v5, %v428_v25 }
 0x11c   : > { %v453_v30 = vsel %vm452_vm12, %v1265_v3, %v449_v26  ;;  %v1297_v3 = vmov 32.0  }
 0x11d   : > { %v433_v35 = vsel %vm432_vm14, %v1267_v5, %v429_v29  ;;  %v1447_v37 = vmul.f32 %v453_v30, %v413_v57  ;;  %v461_v50 = vmul.f32 %v453_v30, %v1408_v33  ;;  %v1247_v33 = vld [vmem:[%s1664_s5] ss:$0 sm:$0xff]  ;;  %1268 = vrcp.f32 %v1297_v3 }
 0x11e   : > { %v459_v38 = vmul.f32 %v433_v35, %v1411_v34  ;;  %v1451_v45 = vmul.f32 %v433_v35, %v411_v58  ;;  %v1459_v34 = vpop.permute.xlu1 %499  ;;  %v1461_v42 = vpop.permute.xlu2 %495 }
 0x11f   : > { %v485_v52 = vmul.f32 %v1435_v43, %v461_v50  ;;  %v504_v55 = vadd.f32 %v1461_v42, %v484_v53 }
 0x120   : > { %v483_v46 = vmul.f32 %v470_v36, %v459_v38 }
 0x121   : > { %v505_v54 = vadd.f32 %v1459_v34, %v485_v52 }
 0x122   : > { %v503_v47 = vadd.f32 %v1445_v28, %v483_v46 }
 0x123   : > { %v510_v56 = vpack.c.bf16 %v505_v54, %v504_v55  ;;  %v1269_v4 = vpop.eup %1268 }
 0x124   : > { %v509_v48 = vpack.c.bf16 %v503_v47, %v502_v24  ;;  %v556_v5 = vmul.f32 32.0, %v1269_v4 }
 0x126   : > { %1169 = vmatmul.msk.bf16.vlgmr.msra.gmra.mxu0 %vm362_vm0, %v509_v48  ;;  %v557_v6 = vsub.f32 1.0, %v556_v5 }
 0x128   : > { %v558_v8 = vmul.f32 %v1269_v4, %v557_v6 }
 0x12a   : > { %v559_v9 = vadd.f32 %v1269_v4, %v558_v8 }
 0x136   : > { %1170 = vmatmul.msk.bf16.gmra.mxu0 %vm362_vm0, %v510_v56  ;;  %vm560_vm0 = vweird.f32 %v1269_v4 }
 0x137   : > { %v1473_v10 = vsel %vm560_vm0, %v1269_v4, %v559_v9 }
 0x1a3   : > { %v532_v57 = vpop.f32.mrf.mxu0 }
 0x1a4   : > { %v533_v62 = vadd.f32 %v1247_v33, %v532_v57 }
 0x1a6   : > { %v543_v2 = vsel %vm542_vm15, %v533_v62, 0.0 }
 0x1ab   : > { %v534_v23 = vpop.f32.mrf.mxu0 }
 0x1ac   : > { %v535_v58 = vadd.f32 %v1247_v33, %v534_v23 }
 0x1ae   : > { %v546_v43 = vsel %vm542_vm15, %v535_v58, 0.0 }
 0x1af   : > { %547 = vadd.xlane.f32.xlu1 %v546_v43 }
 0x1b3   : > { %v537_v59 = vpop.f32.mrf.mxu0 }
 0x1b4   : > { %v538_v60 = vadd.f32 %v1247_v33, %v537_v59 }
 0x1b6   : > { %v549_v61 = vsel %vm542_vm15, %v538_v60, 0.0 }
 0x1b7   : > { %550 = vadd.xlane.f32.xlu2 %v549_v61 }
 0x1bb   : > { %v539_v63 = vpop.f32.mrf.mxu0 }
 0x1bc   : > { %v540_v0 = vadd.f32 %v1247_v33, %v539_v63  ;;  %v1248_v63 = vld [vmem:[%s1664_s5 + $0x1] ss:$0 sm:$0xff] }
 0x1be   : > { %v552_v1 = vsel %vm542_vm15, %v540_v0, 0.0 }
 0x1bf   : > { %553 = vadd.xlane.f32.xlu0 %v552_v1  ;;  %544 = vadd.xlane.f32.xlu2 %v543_v2  ;;  %v1249_v2 = vld [vmem:[%s1664_s5 + $0x2] ss:$0 sm:$0xff] }
 0x222   : > { %v548_v12 = vpop.xlane.xlu1 %547 }
 0x223   : > { %v563_v13 = vmul.f32 %v1473_v10, %v548_v12 }
 0x225   : > { %v567_v14 = vsub.f32 %v535_v58, %v563_v13 }
 0x227   : > { %v571_v15 = vmul.f32 %v567_v14, %v567_v14 }
 0x229   : > { %v577_v17 = vsel %vm542_vm15, %v571_v15, 0.0 }
 0x22a   : > { %v551_v19 = vpop.xlane.xlu2 %550  ;;  %578 = vadd.xlane.f32.xlu2 %v577_v17 }
 0x22b   : > { %v564_v20 = vmul.f32 %v1473_v10, %v551_v19 }
 0x22d   : > { %v1478_v25 = vsub.f32 %v538_v60, %v564_v20 }
 0x22f   : > { %v572_v26 = vmul.f32 %v1478_v25, %v1478_v25 }
 0x231   : > { %v580_v27 = vsel %vm542_vm15, %v572_v26, 0.0 }
 0x232   : > { %v554_v29 = vpop.xlane.xlu0 %553  ;;  %581 = vadd.xlane.f32.xlu1 %v580_v27  ;;  %v545_v30 = vpop.xlane.xlu2 %544 }
 0x233   : > { %v565_v35 = vmul.f32 %v1473_v10, %v554_v29  ;;  %v562_v38 = vmul.f32 %v1473_v10, %v545_v30 }
 0x235   : > { %v1484_v36 = vsub.f32 %v540_v0, %v565_v35  ;;  %v1489_v46 = vsub.f32 %v533_v62, %v562_v38 }
 0x237   : > { %v573_v44 = vmul.f32 %v1484_v36, %v1484_v36  ;;  %v570_v24 = vmul.f32 %v1489_v46, %v1489_v46 }
 0x239   : > { %v583_v47 = vsel %vm542_vm15, %v573_v44, 0.0  ;;  %v574_v48 = vsel %vm542_vm15, %v570_v24, 0.0 }
 0x23a   : > { %584 = vadd.xlane.f32.xlu0 %v583_v47 }
 0x242   : > { %575 = vadd.xlane.f32.xlu0 %v574_v48 }
 0x29d   : > { %v579_v49 = vpop.xlane.xlu2 %578 }
 0x29e   : > { %v587_v50 = vmul.f32 %v579_v49, %v1473_v10 }
 0x2a0   : > { %v591_v51 = vadd.f32 1e-05, %v587_v50 }
 0x2a2   : > { %1270 = vrsqrt.f32 %v591_v51  ;;  %vm610_vm2 = vweird.f32 %v591_v51 }
 0x2a5   : > { %v582_v52 = vpop.xlane.xlu1 %581 }
 0x2a6   : > { %v588_v53 = vmul.f32 %v582_v52, %v1473_v10 }
 0x2a8   : > { %v1271_v54 = vpop.eup %1270  ;;  %v592_v55 = vadd.f32 1e-05, %v588_v53 }
 0x2a9   : > { %v605_v56 = vmul.f32 %v1271_v54, %v591_v51  ;;  %vm611_vm1 = vweird.f32 %v1271_v54 }
 0x2aa   : > { %1272 = vrsqrt.f32 %v592_v55  ;;  %vm612_vm3 = vmor %vm610_vm2, %vm611_vm1  ;;  %vm620_vm5 = vweird.f32 %v592_v55 }
 0x2ab   : > { %v606_v57 = vmul.f32 %v1271_v54, %v605_v56 }
 0x2ad   : > { %v607_v33 = vmul.f32 0.5, %v606_v57  ;;  %v585_v23 = vpop.xlane.xlu0 %584 }
 0x2ae   : > { %v589_v58 = vmul.f32 %v585_v23, %v1473_v10 }
 0x2af   : > { %v608_v43 = vsub.f32 1.5, %v607_v33 }
 0x2b0   : > { %v1273_v59 = vpop.eup %1272  ;;  %v593_v60 = vadd.f32 1e-05, %v589_v58 }
 0x2b1   : > { %v609_v61 = vmul.f32 %v1271_v54, %v608_v43  ;;  %v615_v62 = vmul.f32 %v1273_v59, %v592_v55  ;;  %vm621_vm4 = vweird.f32 %v1273_v59 }
 0x2b2   : > { %1274 = vrsqrt.f32 %v593_v60  ;;  %vm622_vm6 = vmor %vm620_vm5, %vm621_vm4  ;;  %vm630_vm8 = vweird.f32 %v593_v60 }
 0x2b3   : > { %v613_v0 = vsel %vm612_vm3, %v1271_v54, %v609_v61  ;;  %v616_v1 = vmul.f32 %v1273_v59, %v615_v62  ;;  %v660_v61 = vld [vmem:[%s1662_s3 + $0x10] sm:$0xff]  ;;  %v661_v62 = vld [vmem:[%s1662_s3 + $0x18] sm:$0xff] }
 0x2b4   : > { %v635_v3 = vmul.f32 %v613_v0, %v567_v14 }
 0x2b5   : > { %v617_v4 = vmul.f32 0.5, %v616_v1  ;;  %v576_v5 = vpop.xlane.xlu0 %575  ;;  %v1250_v1 = vld [vmem:[%s1665_s6] ss:$0 sm:$0xff] }
 0x2b6   : > { %v586_v6 = vmul.f32 %v576_v5, %v1473_v10  ;;  %v640_v8 = vmul.f32 %v1248_v63, %v635_v3 }
 0x2b7   : > { %v618_v9 = vsub.f32 1.5, %v617_v4 }
 0x2b8   : > { %v1275_v12 = vpop.eup %1274  ;;  %v590_v13 = vadd.f32 1e-05, %v586_v6  ;;  %v645_v15 = vadd.f32 %v1249_v2, %v640_v8  ;;  %v1252_v8 = vld [vmem:[%s1665_s6 + $0x4] ss:$0 sm:$0xff] }
 0x2b9   : > { %v619_v17 = vmul.f32 %v1273_v59, %v618_v9  ;;  %v625_v19 = vmul.f32 %v1275_v12, %v593_v60  ;;  %vm631_vm7 = vweird.f32 %v1275_v12 }
 0x2ba   : > { %1276 = vrsqrt.f32 %v590_v13  ;;  %vm632_vm9 = vmor %vm630_vm8, %vm631_vm7  ;;  %vm600_vm11 = vweird.f32 %v590_v13 }
 0x2bb   : > { %v626_v20 = vmul.f32 %v1275_v12, %v625_v19  ;;  %v623_v26 = vsel %vm622_vm6, %v1273_v59, %v619_v17  ;;  %v658_v59 = vld [vmem:[%s1662_s3] sm:$0xff] }
 0x2bc   : > { %v636_v30 = vmul.f32 %v623_v26, %v1478_v25  ;;  %v1255_v26 = vld [vmem:[%s1665_s6 + $0x3] ss:$0 sm:$0xff] }
 0x2bd   : > { %v627_v27 = vmul.f32 0.5, %v626_v20  ;;  %v1254_v20 = vld [vmem:[%s1665_s6 + $0x2] ss:$0 sm:$0xff] }
 0x2be   : > { %v641_v48 = vmul.f32 %v1248_v63, %v636_v30 }
 0x2bf   : > { %v628_v29 = vsub.f32 1.5, %v627_v27 }
 0x2c0   : > { %v1277_v14 = vpop.eup %1276  ;;  %v646_v52 = vadd.f32 %v1249_v2, %v641_v48 }
 0x2c1   : > { %v629_v35 = vmul.f32 %v1275_v12, %v628_v29  ;;  %v595_v38 = vmul.f32 %v1277_v14, %v590_v13  ;;  %vm601_vm10 = vweird.f32 %v1277_v14 }
 0x2c2   : > { %vm602_vm12 = vmor %vm600_vm11, %vm601_vm10 }
 0x2c3   : > { %v633_v44 = vsel %vm632_vm9, %v1275_v12, %v629_v35  ;;  %v596_v47 = vmul.f32 %v1277_v14, %v595_v38  ;;  %v1253_v12 = vld [vmem:[%s1665_s6 + $0x5] ss:$0 sm:$0xff] }
 0x2c4   : > { %v637_v24 = vmul.f32 %v633_v44, %v1484_v36 }
 0x2c5   : > { %v597_v49 = vmul.f32 0.5, %v596_v47 }
 0x2c6   : > { %v642_v50 = vmul.f32 %v1248_v63, %v637_v24 }
 0x2c7   : > { %v598_v51 = vsub.f32 1.5, %v597_v49 }
 0x2c8   : > { %v647_v53 = vadd.f32 %v1249_v2, %v642_v50 }
 0x2c9   : > { %v599_v54 = vmul.f32 %v1277_v14, %v598_v51 }
 0x2ca   : > { %v1239_v55 = vpack.i.bf16 %v646_v52, %v647_v53 }
 0x2cb   : > { %v603_v25 = vsel %vm602_vm12, %v1277_v14, %v599_v54  ;;  %v1256_v54 = vld [vmem:[%s1665_s6 + $0x6] ss:$0 sm:$0xff] }
 0x2cc   : > { %1240 = vrot.lane.b32.xlu1 %v1239_v55, %s1298_s26  ;;  %v634_v56 = vmul.f32 %v603_v25, %v1489_v46  ;;  %v659_v46 = vld [vmem:[%s1662_s3 + $0x8] sm:$0xff]  ;;  %v1257_v55 = vld [vmem:[%s1665_s6 + $0x7] ss:$0 sm:$0xff] }
 0x2ce   : > { %v639_v57 = vmul.f32 %v1248_v63, %v634_v56 }
 0x2d0   : > { %v644_v33 = vadd.f32 %v1249_v2, %v639_v57  ;;  %v1251_v2 = vld [vmem:[%s1665_s6 + $0x1] ss:$0 sm:$0xff] }
 0x33e   : > { %v1241_v23 = vpop.permute.xlu1 %1240 }
 0x33f   : > { %v1243_v36 = vunpack.i.h.bf16 %v1241_v23  ;;  %v1242_v58 = vunpack.i.l.bf16 %v1241_v23 }
 0x341   : > { %v657_v43 = vsel %vm542_vm15, %v645_v15, %v1242_v58  ;;  %v656_v60 = vsel %vm542_vm15, %v644_v33, %v1243_v36 }
 0x342   : > { %689 = vmatpush.msra.mxu1 %v657_v43 }
 0x344   : > { %690 = vmatpush.msra.mxu1 %v656_v60 }
 0x345   : > { %1171 = vmatmul.msk.f32.vlgmr.msra.gmra.mxu1 %vm662_vm13, %v658_v59 }
 0x34d   : > { %1172 = vmatmul.msk.f32.gmra.mxu1 %vm662_vm13, %v659_v46 }
 0x355   : > { %1173 = vmatmul.msk.f32.gmra.mxu1 %vm662_vm13, %v660_v61 }
 0x35d   : > { %1174 = vmatmul.msk.f32.gmra.mxu1 %vm662_vm13, %v661_v62 }
 0x3c2   : > { %v1526_v63 = vpop.f32.mrf.mxu1 }
 0x3c3   : > { %v713_v4 = vmul.f32 %v1250_v1, %v1526_v63  ;;  %v727_v5 = vmul.f32 %v1251_v2, %v1526_v63 }
 0x3ca   : > { %v1528_v0 = vpop.f32.mrf.mxu1 }
 0x3cb   : > { %v714_v47 = vmul.f32 %v1250_v1, %v1528_v0  ;;  %v728_v24 = vmul.f32 %v1251_v2, %v1528_v0 }
 0x3d2   : > { %v1536_v3 = vpop.f32.mrf.mxu1 }
 0x3d3   : > { %v716_v6 = vmul.f32 %v1251_v2, %v1536_v3  ;;  %v725_v9 = vmul.f32 %v1250_v1, %v1536_v3 }
 0x3d5   : > { %v718_v13 = vsub.f32 %v713_v4, %v716_v6  ;;  %v729_v15 = vadd.f32 %v727_v5, %v725_v9 }
 0x3d7   : > { %v721_v17 = vadd.f32 %v1252_v8, %v718_v13  ;;  %v732_v19 = vadd.f32 %v1253_v12, %v729_v15 }
 0x3d9   : > { %v723_v27 = vmax.f32 %v721_v17, 0.0  ;;  %v734_v29 = vmax.f32 %v732_v19, 0.0 }
 0x3da   : > { %v701_v14 = vpop.f32.mrf.mxu1 }
 0x3db   : > { %v737_v30 = vmul.f32 %v1254_v20, %v723_v27  ;;  %v740_v35 = vmul.f32 %v1255_v26, %v734_v29  ;;  %v747_v38 = vmul.f32 %v1254_v20, %v734_v29  ;;  %v749_v44 = vmul.f32 %v1255_v26, %v723_v27 }
 0x3dc   : > { %v717_v48 = vmul.f32 %v1251_v2, %v701_v14  ;;  %v726_v49 = vmul.f32 %v1250_v1, %v701_v14 }
 0x3dd   : > { %v742_v50 = vsub.f32 %v737_v30, %v740_v35  ;;  %v751_v51 = vadd.f32 %v749_v44, %v747_v38 }
 0x3de   : > { %v719_v52 = vsub.f32 %v714_v47, %v717_v48  ;;  %v730_v53 = vadd.f32 %v728_v24, %v726_v49 }
 0x3df   : > { %v745_v23 = vadd.f32 %v1256_v54, %v742_v50  ;;  %v754_v36 = vadd.f32 %v1257_v55, %v751_v51 }
 0x3e0   : > { %v722_v25 = vadd.f32 %v1252_v8, %v719_v52  ;;  %v733_v56 = vadd.f32 %v1253_v12, %v730_v53 }
 0x3e1   : > { %v762_v62 = vadd.f32 0.01, %v745_v23  ;;  %v774_v1 = vadd.f32 0.01, %v754_v36  ;;  %vm760_vm14 = vcmp.lt.f32.partialorder %v745_v23, -0.01 }
 0x3e2   : > { %v724_v57 = vmax.f32 %v722_v25, 0.0  ;;  %v735_v33 = vmax.f32 %v733_v56, 0.0  ;;  %vm772_vm0 = vcmp.lt.f32.partialorder %v754_v36, -0.01  ;;  %v1175_v5 = vadd.f32 -0.01, %v745_v23 }
 0x3e3   : > { %v1177_v6 = vadd.f32 -0.01, %v754_v36  ;;  %v764_v9 = vsel %vm760_vm14, %v762_v62, 0.0  ;;  %v776_v12 = vsel %vm772_vm0, %v774_v1, 0.0  ;;  %vm756_vm2 = vcmp.gt.f32.partialorder %v745_v23, 0.01 }
 0x3e4   : > { %v738_v58 = vmul.f32 %v1254_v20, %v724_v57  ;;  %v741_v43 = vmul.f32 %v1255_v26, %v735_v33  ;;  %v748_v59 = vmul.f32 %v1254_v20, %v735_v33  ;;  %v750_v60 = vmul.f32 %v1255_v26, %v724_v57 }
 0x3e5   : > { %vm768_vm4 = vcmp.gt.f32.partialorder %v754_v36, 0.01  ;;  %v766_v20 = vsel %vm756_vm2, %v1175_v5, %v764_v9 }
 0x3e6   : > { %v743_v46 = vsub.f32 %v738_v58, %v741_v43  ;;  %v752_v61 = vadd.f32 %v750_v60, %v748_v59  ;;  %v778_v26 = vsel %vm768_vm4, %v1177_v6, %v776_v12  ;;  %v788_v48 = vmul.f32 %v766_v20, %v1536_v3 }
 0x3e7   : > { %v786_v24 = vmul.f32 %v778_v26, %v1526_v63  ;;  %v780_v49 = vmul.f32 %v766_v20, %v1526_v63  ;;  %v782_v50 = vmul.f32 %v778_v26, %v1536_v3  ;;  %v792_v63 = vld [vmem:[%s1663_s4] sm:$0xff]  ;;  %v793_v3 = vld [vmem:[%s1663_s4 + $0x8] sm:$0xff] }
 0x3e8   : > { %v746_v2 = vadd.f32 %v1256_v54, %v743_v46  ;;  %v755_v4 = vadd.f32 %v1257_v55, %v752_v61 }
 0x3e9   : > { %v790_v53 = vadd.f32 %v788_v48, %v786_v24  ;;  %v784_v54 = vsub.f32 %v780_v49, %v782_v50  ;;  %v1208_v48 = vld [vmem:[%s1666_s7] sm:$0xff] }
 0x3ea   : > { %v1176_v8 = vadd.f32 -0.01, %v746_v2  ;;  %vm761_vm1 = vcmp.lt.f32.partialorder %v746_v2, -0.01  ;;  %v763_v13 = vadd.f32 0.01, %v746_v2 }
 0x3eb   : > { %v1178_v15 = vadd.f32 -0.01, %v755_v4  ;;  %vm773_vm3 = vcmp.lt.f32.partialorder %v755_v4, -0.01  ;;  %v775_v17 = vadd.f32 0.01, %v755_v4 }
 0x3ec   : > { %vm757_vm5 = vcmp.gt.f32.partialorder %v746_v2, 0.01  ;;  %v765_v19 = vsel %vm761_vm1, %v763_v13, 0.0  ;;  %vm769_vm6 = vcmp.gt.f32.partialorder %v755_v4, 0.01 }
 0x3ed   : > { %v767_v27 = vsel %vm757_vm5, %v1176_v8, %v765_v19  ;;  %v777_v29 = vsel %vm773_vm3, %v775_v17, 0.0 }
 0x3ee   : > { %v779_v30 = vsel %vm769_vm6, %v1178_v15, %v777_v29  ;;  %v789_v35 = vmul.f32 %v767_v27, %v701_v14  ;;  %v781_v38 = vmul.f32 %v767_v27, %v1528_v0 }
 0x3ef   : > { %v787_v44 = vmul.f32 %v779_v30, %v1528_v0  ;;  %v783_v47 = vmul.f32 %v779_v30, %v701_v14  ;;  %v794_v0 = vld [vmem:[%s1663_s4 + $0x10] sm:$0xff]  ;;  %v795_v14 = vld [vmem:[%s1663_s4 + $0x18] sm:$0xff] }
 0x3f1   : > { %v791_v51 = vadd.f32 %v789_v35, %v787_v44  ;;  %v785_v52 = vsub.f32 %v781_v38, %v783_v47  ;;  %v1209_v47 = vld [vmem:[%s1666_s7 + $0x8] sm:$0xff] }
 0x3f3   : > { %816 = vmatpush.msrb.mxu0 %v791_v51  ;;  %1212 = vmatpush.msra.mxu2 %v791_v51 }
 0x3f4   : > { %845 = vmatpush.msrb.mxu1 %v785_v52  ;;  %1214 = vmatpush.msra.mxu3 %v785_v52 }
 0x3f5   : > { %817 = vmatpush.msrb.mxu0 %v790_v53  ;;  %1213 = vmatpush.msra.mxu2 %v790_v53 }
 0x3f6   : > { %846 = vmatpush.msrb.mxu1 %v784_v54  ;;  %1215 = vmatpush.msra.mxu3 %v784_v54 }
 0x3f7   : > { %1179 = vmatmul.msk.f32.vlgmr.msrb.gmra.mxu0 %vm662_vm13, %v794_v0  ;;  %1180 = vmatmul.msk.f32.vlgmr.msra.gmra.mxu2 %vm662_vm13, %v795_v14 }
 0x3f8   : > { %1181 = vmatmul.msk.f32.vlgmr.msrb.gmra.mxu1 %vm662_vm13, %v792_v63  ;;  %1182 = vmatmul.msk.f32.vlgmr.msra.gmra.mxu3 %vm662_vm13, %v793_v3 }
 0x3f9   : > { %983 = vmatpush.bf16.msrb.mxu2 %v1209_v47  ;;  %v1211_v47 = vld [vmem:[%s1667_s8 + $0x8] sm:$0xff] }
 0x3fa   : > { %1041 = vmatpush.bf16.msrb.mxu3 %v1211_v47 }
 0x3fd   : > { %984 = vmatpush.bf16.msrb.mxu2 %v1208_v48  ;;  %v1300_v48 = vmov 2  }
 0x3fe   : > { %1245 = vset.pattern.permute.xlu1 %v1300_v48  ;;  %1244 = vset.pattern.permute.xlu2 %v1300_v48 }
 0x3ff   : > { %1246 = vset.pattern.permute.xlu0 %v1300_v48 }
 0x474   : > { %v819_v55 = vpop.f32.mrf.mxu0 }
 0x475   : > { %v848_v25 = vpop.f32.mrf.mxu1 }
 0x476   : > { %v849_v56 = vadd.f32 %v848_v25, %v819_v55 }
 0x478   : > { %856 = vrot.lane.b32.xlu2 %v849_v56, %s1299_s21  ;;  %v862_v57 = vsel %vm542_vm15, %v849_v56, 0.0 }
 0x479   : > { %863 = vadd.xlane.f32.xlu1 %v862_v57 }
 0x47a   : > { %v822_v33 = vpop.f32.mrf.mxu2 }
 0x47b   : > { %v851_v23 = vpop.f32.mrf.mxu3 }
 0x47c   : > { %v852_v36 = vadd.f32 %v851_v23, %v822_v33 }
 0x47e   : > { %858 = vrot.lane.b32.xlu0 %v852_v36, %s1299_s21  ;;  %v865_v58 = vsel %vm542_vm15, %v852_v36, 0.0 }
 0x4a8   : > { %866 = vadd.xlane.f32.xlu0 %v865_v58 }
 0x4d2   : > { %v857_v43 = vpop.permute.xlu2 %856 }
 0x4d3   : > { %v868_v59 = vsel %vm542_vm15, %v857_v43, 0.0 }
 0x4d4   : > { %869 = vadd.xlane.f32.xlu2 %v868_v59 }
 0x4ec   : > { %v864_v60 = vpop.xlane.xlu1 %863 }
 0x4ed   : > { %v874_v46 = vmul.f32 %v864_v60, %v1473_v10 }
 0x4ef   : > { %v878_v61 = vsub.f32 %v849_v56, %v874_v46 }
 0x4f0   : > { %v859_v62 = vpop.permute.xlu0 %858 }
 0x4f1   : > { %v871_v1 = vsel %vm542_vm15, %v859_v62, 0.0  ;;  %v882_v2 = vmul.f32 %v878_v61, %v878_v61 }
 0x4f2   : > { %872 = vadd.xlane.f32.xlu1 %v871_v1 }
 0x4f3   : > { %v886_v4 = vsel %vm542_vm15, %v882_v2, 0.0 }
 0x4f4   : > { %887 = vadd.xlane.f32.xlu0 %v886_v4 }
 0x51b   : > { %v867_v5 = vpop.xlane.xlu0 %866 }
 0x51c   : > { %v875_v6 = vmul.f32 %v867_v5, %v1473_v10 }
 0x51e   : > { %v879_v8 = vsub.f32 %v852_v36, %v875_v6 }
 0x520   : > { %v883_v9 = vmul.f32 %v879_v8, %v879_v8 }
 0x522   : > { %v889_v12 = vsel %vm542_vm15, %v883_v9, 0.0 }
 0x523   : > { %890 = vadd.xlane.f32.xlu2 %v889_v12 }
 0x53b   : > { %1059 = vperm.xlu2 %1244, %v1375_v7  }
 0x543   : > { %1071 = vperm.xlu2 %1244, %v1383_v11  }
 0x547   : > { %v870_v13 = vpop.xlane.xlu2 %869 }
 0x548   : > { %v876_v15 = vmul.f32 %v870_v13, %v1473_v10 }
 0x54a   : > { %v1593_v17 = vsub.f32 %v857_v43, %v876_v15 }
 0x54c   : > { %v884_v19 = vmul.f32 %v1593_v17, %v1593_v17 }
 0x54e   : > { %v892_v20 = vsel %vm542_vm15, %v884_v19, 0.0 }
 0x54f   : > { %893 = vadd.xlane.f32.xlu1 %v892_v20 }
 0x565   : > { %v873_v26 = vpop.xlane.xlu1 %872 }
 0x566   : > { %v877_v27 = vmul.f32 %v873_v26, %v1473_v10 }
 0x567   : > { %v888_v38 = vpop.xlane.xlu0 %887 }
 0x568   : > { %v1599_v29 = vsub.f32 %v859_v62, %v877_v27  ;;  %v898_v44 = vmul.f32 %v888_v38, %v1473_v10  ;;  %1063 = vperm.xlu1 %1245, %v1420_v39  }
 0x56a   : > { %v885_v30 = vmul.f32 %v1599_v29, %v1599_v29  ;;  %v902_v24 = vadd.f32 1e-05, %v898_v44 }
 0x56c   : > { %v895_v35 = vsel %vm542_vm15, %v885_v30, 0.0  ;;  %1278 = vrsqrt.f32 %v902_v24  ;;  %vm912_vm8 = vweird.f32 %v902_v24 }
 0x56d   : > { %896 = vadd.xlane.f32.xlu0 %v895_v35 }
 0x572   : > { %v1279_v49 = vpop.eup %1278 }
 0x573   : > { %v907_v50 = vmul.f32 %v1279_v49, %v902_v24  ;;  %vm913_vm7 = vweird.f32 %v1279_v49  ;;  %v1210_v24 = vld [vmem:[%s1667_s8] sm:$0xff] }
 0x574   : > { %vm914_vm10 = vmor %vm912_vm8, %vm913_vm7  ;;  %1042 = vmatpush.bf16.msrb.mxu3 %v1210_v24  ;;  %vm1086_vm8 = vcmask 31744  }
 0x575   : > { %v908_v54 = vmul.f32 %v1279_v49, %v907_v50 }
 0x577   : > { %v909_v0 = vmul.f32 0.5, %v908_v54 }
 0x579   : > { %v910_v63 = vsub.f32 1.5, %v909_v0 }
 0x57b   : > { %v911_v25 = vmul.f32 %v1279_v49, %v910_v63 }
 0x57d   : > { %v915_v33 = vsel %vm914_vm10, %v1279_v49, %v911_v25 }
 0x57e   : > { %v946_v58 = vmul.f32 %v915_v33, %v878_v61 }
 0x581   : > { %1067 = vperm.xlu0 %1246, %v1426_v40  }
 0x596   : > { %v891_v51 = vpop.xlane.xlu2 %890 }
 0x597   : > { %v899_v52 = vmul.f32 %v891_v51, %v1473_v10 }
 0x599   : > { %v903_v53 = vadd.f32 1e-05, %v899_v52 }
 0x59b   : > { %1280 = vrsqrt.f32 %v903_v53  ;;  %vm922_vm11 = vweird.f32 %v903_v53 }
 0x5a1   : > { %v1281_v14 = vpop.eup %1280 }
 0x5a2   : > { %v917_v3 = vmul.f32 %v1281_v14, %v903_v53  ;;  %vm923_vm9 = vweird.f32 %v1281_v14 }
 0x5a3   : > { %vm924_vm12 = vmor %vm922_vm11, %vm923_vm9 }
 0x5a4   : > { %v918_v55 = vmul.f32 %v1281_v14, %v917_v3 }
 0x5a6   : > { %v919_v56 = vmul.f32 0.5, %v918_v55 }
 0x5a8   : > { %v920_v57 = vsub.f32 1.5, %v919_v56 }
 0x5aa   : > { %v921_v23 = vmul.f32 %v1281_v14, %v920_v57 }
 0x5ac   : > { %v925_v36 = vsel %vm924_vm12, %v1281_v14, %v921_v23  ;;  %v1014_v23 = vld [vmem:[%s1667_s8 + $0x10] sm:$0x1] }
 0x5ad   : > { %v947_v43 = vmul.f32 %v925_v36, %v879_v8  ;;  %v1015_v36 = vunpack.c.l.bf16 %v1014_v23 }
 0x5af   : > { %v950_v59 = vpack.c.bf16 %v947_v43, %v946_v58  ;;  %v1016_v58 = vperm.slane %v1015_v36, 0 }
 0x5b1   : > { %1191 = vmatmul.msk.bf16.vlgmr.msrb.gmra.mxu2 %vm542_vm15, %v950_v59 }
 0x5c2   : > { %v894_v60 = vpop.xlane.xlu1 %893 }
 0x5c3   : > { %v900_v46 = vmul.f32 %v894_v60, %v1473_v10  ;;  %v1060_v60 = vpop.permute.xlu2 %1059 }
 0x5c5   : > { %v904_v62 = vadd.f32 1e-05, %v900_v46 }
 0x5c7   : > { %1282 = vrsqrt.f32 %v904_v62  ;;  %vm932_vm14 = vweird.f32 %v904_v62 }
 0x5cd   : > { %v1283_v1 = vpop.eup %1282 }
 0x5ce   : > { %v927_v2 = vmul.f32 %v1283_v1, %v904_v62  ;;  %vm933_vm13 = vweird.f32 %v1283_v1 }
 0x5cf   : > { %vm934_vm1 = vmor %vm932_vm14, %vm933_vm13 }
 0x5d0   : > { %v928_v9 = vmul.f32 %v1283_v1, %v927_v2 }
 0x5d2   : > { %v929_v12 = vmul.f32 0.5, %v928_v9 }
 0x5d4   : > { %v930_v61 = vsub.f32 1.5, %v929_v12 }
 0x5d6   : > { %v931_v19 = vmul.f32 %v1283_v1, %v930_v61 }
 0x5d8   : > { %v935_v30 = vsel %vm934_vm1, %v1283_v1, %v931_v19 }
 0x5d9   : > { %v948_v35 = vmul.f32 %v935_v30, %v1593_v17  ;;  %v956_v17 = vld [vmem:[%s1666_s7 + $0x10] sm:$0x1] }
 0x5e0   : > { %v897_v4 = vpop.xlane.xlu0 %896 }
 0x5e1   : > { %v901_v5 = vmul.f32 %v897_v4, %v1473_v10 }
 0x5e3   : > { %v905_v6 = vadd.f32 1e-05, %v901_v5 }
 0x5e5   : > { %1284 = vrsqrt.f32 %v905_v6  ;;  %vm942_vm2 = vweird.f32 %v905_v6 }
 0x5eb   : > { %v1285_v13 = vpop.eup %1284 }
 0x5ec   : > { %v937_v8 = vmul.f32 %v1285_v13, %v905_v6  ;;  %vm943_vm0 = vweird.f32 %v1285_v13  ;;  %v1064_v6 = vpop.permute.xlu1 %1063 }
 0x5ed   : > { %vm944_vm3 = vmor %vm942_vm2, %vm943_vm0 }
 0x5ee   : > { %v938_v15 = vmul.f32 %v1285_v13, %v937_v8 }
 0x5f0   : > { %v939_v20 = vmul.f32 0.5, %v938_v15 }
 0x5f2   : > { %v940_v26 = vsub.f32 1.5, %v939_v20 }
 0x5f3   : > { %v1068_v8 = vpop.permute.xlu0 %1067 }
 0x5f4   : > { %v941_v27 = vmul.f32 %v1285_v13, %v940_v26 }
 0x5f6   : > { %v945_v10 = vsel %vm944_vm3, %v1285_v13, %v941_v27 }
 0x5f7   : > { %v949_v38 = vmul.f32 %v945_v10, %v1599_v29  ;;  %v957_v29 = vunpack.c.l.bf16 %v956_v17 }
 0x5f9   : > { %v951_v44 = vpack.c.bf16 %v949_v38, %v948_v35  ;;  %v958_v50 = vperm.slane %v957_v29, 0 }
 0x5fb   : > { %1192 = vmatmul.msk.bf16.gmra.mxu2 %vm542_vm15, %v951_v44 }
 0x634   : > { %v986_v49 = vpop.f32.mrf.mxu2 }
 0x635   : > { %v987_v51 = vadd.f32 %v986_v49, %v958_v50 }
 0x637   : > { %v1000_v53 = vmul.f32 0.01, %v987_v51  ;;  %vm996_vm4 = vcmp.ge.f32.partialorder %v987_v51, 0.0 }
 0x639   : > { %v1004_v7 = vsel %vm996_vm4, %v987_v51, %v1000_v53 }
 0x63c   : > { %v988_v52 = vpop.f32.mrf.mxu2 }
 0x63d   : > { %v989_v54 = vadd.f32 %v988_v52, %v958_v50 }
 0x63f   : > { %vm997_vm5 = vcmp.ge.f32.partialorder %v989_v54, 0.0  ;;  %v1001_v39 = vmul.f32 0.01, %v989_v54 }
 0x641   : > { %v1005_v0 = vsel %vm997_vm5, %v989_v54, %v1001_v39 }
 0x642   : > { %v1008_v14 = vpack.c.bf16 %v1005_v0, %v1004_v7 }
 0x644   : > { %1201 = vmatmul.msk.bf16.vlgmr.msrb.gmra.mxu3 %vm542_vm15, %v1008_v14 }
 0x67e   : > { %v991_v40 = vpop.f32.mrf.mxu2 }
 0x67f   : > { %v992_v63 = vadd.f32 %v991_v40, %v958_v50 }
 0x681   : > { %v1002_v55 = vmul.f32 0.01, %v992_v63  ;;  %vm998_vm6 = vcmp.ge.f32.partialorder %v992_v63, 0.0 }
 0x683   : > { %v1006_v56 = vsel %vm998_vm6, %v992_v63, %v1002_v55 }
 0x686   : > { %v993_v3 = vpop.f32.mrf.mxu2 }
 0x687   : > { %v994_v11 = vadd.f32 %v993_v3, %v958_v50 }
 0x689   : > { %vm999_vm7 = vcmp.ge.f32.partialorder %v994_v11, 0.0  ;;  %v1003_v25 = vmul.f32 0.01, %v994_v11 }
 0x68b   : > { %v1007_v57 = vsel %vm999_vm7, %v994_v11, %v1003_v25 }
 0x68c   : > { %v1009_v33 = vpack.c.bf16 %v1007_v57, %v1006_v56 }
 0x68e   : > { %1202 = vmatmul.msk.bf16.gmra.mxu3 %vm542_vm15, %v1009_v33 }
 0x6c7   : > { %v1044_v43 = vpop.f32.mrf.mxu3 }
 0x6c8   : > { %v1045_v59 = vadd.f32 %v1044_v43, %v1016_v58 }
 0x6ca   : > { %v1054_v46 = vsub.f32 %v1045_v59, %v1431_v41 }
 0x6cc   : > { %v1074_v62 = vmul.f32 %v1060_v60, %v1054_v46 }
 0x6ce   : > { %v1078_v1 = vmul.f32 %v1074_v62, %v1440_v16 }
 0x6cf   : > { %v1046_v2 = vpop.f32.mrf.mxu3 }
 0x6d0   : > { %v1082_v4 = vadd.f32 %v1078_v1, %v1389_v22  ;;  %v1047_v5 = vadd.f32 %v1046_v2, %v1016_v58 }
 0x6d2   : > { %1087 = vst.msk [vmem:[%s352_s17] sm:$0xff] %vm1086_vm8, %v1082_v4  ;;  %v1055_v9 = vsub.f32 %v1047_v5, %v1445_v28 }
 0x6d4   : > { %v1075_v12 = vmul.f32 %v1064_v6, %v1055_v9 }
 0x6d6   : > { %v1079_v41 = vmul.f32 %v1075_v12, %v1451_v45  ;;  %v1072_v45 = vpop.permute.xlu2 %1071 }
 0x6d8   : > { %v1083_v13 = vadd.f32 %v1079_v41, %v1405_v32 }
 0x6da   : > { %1088 = vst.msk [vmem:[%s352_s17 + $0x8] sm:$0xff] %vm1086_vm8, %v1083_v13 }
 0x711   : > { %v1049_v16 = vpop.f32.mrf.mxu3 }
 0x712   : > { %v1050_v61 = vadd.f32 %v1049_v16, %v1016_v58 }
 0x714   : > { %v1056_v15 = vsub.f32 %v1050_v61, %v1461_v42 }
 0x716   : > { %v1076_v19 = vmul.f32 %v1068_v8, %v1056_v15 }
 0x718   : > { %v1080_v22 = vmul.f32 %v1076_v19, %v1442_v18 }
 0x719   : > { %v1051_v20 = vpop.f32.mrf.mxu3 }
 0x71a   : > { %v1084_v26 = vadd.f32 %v1080_v22, %v1387_v21  ;;  %v1052_v27 = vadd.f32 %v1051_v20, %v1016_v58 }
 0x71c   : > { %1089 = vst.msk [vmem:[%s352_s17 + $0x10] sm:$0xff] %vm1086_vm8, %v1084_v26  ;;  %v1057_v28 = vsub.f32 %v1052_v27, %v1459_v34 }
 0x71e   : > { %v1077_v32 = vmul.f32 %v1072_v45, %v1057_v28 }
 0x720   : > { %v1081_v30 = vmul.f32 %v1077_v32, %v1447_v37 }
 0x722   : > { %v1085_v10 = vadd.f32 %v1081_v30, %v1403_v31 }
 0x724   : > { %1090 = vst.msk [vmem:[%s352_s17 + $0x18] sm:$0xff] %vm1086_vm8, %v1085_v10 }
 0x725 PF: > { %s19_s30 = sadd.s32 1, %s1292_s30  }
 0x726   : > { %p16_p4 = scmp.ge.s32.totalorder %s19_s30, 4  }
 0x728   :  { %18 = sbr.rel (!%p16_p4) target bundleno = 1 (0x1), region = 89 }

</bundles_post_ra>
